<compile_context>
chip_gen: v7x
topology: tpu7x:2x2x1
jax: 0.10.0
libtpu: 0.0.40
codegen_flags: <defaults>
</compile_context>

<pallas_src>
import functools

import jax
import jax.numpy as jnp
from jax import lax
from jax.experimental import pallas as pl
from jax.experimental.pallas import tpu as pltpu

ATTN_EPS = 1e-6   # fast_transformers LinearAttention eps
LN_EPS = 1e-5     # torch.nn.LayerNorm default eps

# row order of the packed per-layer (n_vec, d_model) bias / LayerNorm table
_VECD_ORDER = ("bq", "bk", "bv", "bo", "ln1w", "ln1b", "b2", "ln2w", "ln2b")


# ---------------------------------------------------------------------------
# in-kernel math helpers
# ---------------------------------------------------------------------------
def _elu_feature_map(x):
    # elu(x) + 1 == x + 1 for x > 0, exp(x) for x <= 0
    return jnp.where(x > 0, x + 1.0, jnp.exp(x))


def _gelu_tanh(x):
    # tanh-form GELU (one EUP tanh instead of an erf polynomial); ~3e-3 abs vs exact GELU.
    return 0.5 * x * (1.0 + jnp.tanh(0.7978845608028654 * (x + 0.044715 * x * x * x)))


def _layer_norm(x, w, b, eps=LN_EPS):
    mu = jnp.mean(x, axis=-1, keepdims=True)
    var = jnp.mean((x - mu) ** 2, axis=-1, keepdims=True)
    return (x - mu) * lax.rsqrt(var + eps) * w + b


# ---------------------------------------------------------------------------
# fused Pallas kernel: grid = (batch_block, layer); residual stream resident in VMEM
# ---------------------------------------------------------------------------
def fused_encoder_kernel(
        lens_ref,                                     # SMEM (N_pad,) int32 (scalar prefetch)
        x_ref,                                        # (B_b, L_pad, D) f32 (read at layer 0)
        wq_ref, wk_ref, wv_ref, wo_ref, w1_ref, w2_ref,   # bf16 per-layer weight tiles
        vecd_ref,                                     # (9, D) f32 packed bias / LN vectors
        b1_ref,                                       # (1, F) f32 FFN bias 1
        bdmask_ref,                                   # (D, D) f32 block-diagonal head mask
        lnfw_ref, lnfb_ref,                           # final LayerNorm params
        out_ref,                                      # (B_b, L_pad, D) f32 (written last layer)
        x_vmem,                                       # VMEM scratch (B_b, L_pad, D) f32
        *, chunk, batch_block):
    nb = pl.program_id(0)
    layer = pl.program_id(1)
    n_layers = pl.num_programs(1)
    _, Lp, D = x_vmem.shape
    n_chunks = Lp // chunk
    bf16 = jnp.bfloat16
    f32 = jnp.float32

    # layer 0: pull this batch block's activations into the resident VMEM buffer
    @pl.when(layer == 0)
    def _():
        x_vmem[...] = x_ref[...]

    is_last = layer == n_layers - 1

    # Hoisted small per-layer values: one VMEM load per grid step (not per chunk).
    vec = vecd_ref[...]                               # (9, D) f32
    bq, bk, bv, bo = vec[0:1], vec[1:2], vec[2:3], vec[3:4]
    ln1w, ln1b, b2 = vec[4:5], vec[5:6], vec[6:7]
    ln2w, ln2b = vec[7:8], vec[8:9]
    b1 = b1_ref[...]                                  # (1, F) f32
    lnf_w = lnfw_ref[...]
    lnf_b = lnfb_ref[...]
    bd_mask = bdmask_ref[...]                         # (D, D) f32, host-built, resident
    bd_mask_b = bd_mask.astype(bf16)                  # bf16 copy for the denominator MXU op

    # static (unrolled) loop over the sub-batch handled by this grid step
    for b in range(batch_block):
        length = lens_ref[nb * batch_block + b]       # LengthMask: padding contiguous at end

        # ---- phase 1 (chunked): K/V projections, masked feature map, KV & K-sum ----
        def p1_body(c, carry, _b=b, _length=length):
            kv_acc, ksum_acc = carry
            off = pl.multiple_of(c * chunk, chunk)
            x_cb = x_vmem[_b, pl.ds(off, chunk), :].astype(bf16)
            k = jnp.dot(x_cb, wk_ref[...], preferred_element_type=f32) + bk
            v = jnp.dot(x_cb, wv_ref[...], preferred_element_type=f32) + bv
            kmask = ((lax.broadcasted_iota(jnp.int32, (chunk, 1), 0) + off)
                     < _length).astype(f32)
            kf = _elu_feature_map(k) * kmask          # padded keys zeroed
            # kv[d, m] += sum_s kf[s, d] * v[s, m]   (full-width MXU, masked later)
            kv_acc = kv_acc + lax.dot_general(
                kf.astype(bf16), v.astype(bf16),
                (((0,), (0,)), ((), ())), preferred_element_type=f32)
            ksum_acc = ksum_acc + jnp.sum(kf, axis=0, keepdims=True)
            return kv_acc, ksum_acc

        kv, ksum = lax.fori_loop(
            0, n_chunks, p1_body,
            (jnp.zeros((D, D), f32), jnp.zeros((1, D), f32)))
        kv_b = (kv * bd_mask).astype(bf16)            # keep per-head diagonal blocks only

        # ---- phase 2 (chunked): Q path / out-proj / LN1 / FFN / LN2 (+ fused final LN) ----
        @pl.loop(0, n_chunks)
        def _(c, _b=b):
            off = pl.multiple_of(c * chunk, chunk)
            x_c = x_vmem[_b, pl.ds(off, chunk), :]    # (chunk, D) f32
            q = jnp.dot(x_c.astype(bf16), wq_ref[...],
                        preferred_element_type=f32) + bq
            qf = _elu_feature_map(q)                  # (chunk, D) f32
            num = jnp.dot(qf.astype(bf16), kv_b, preferred_element_type=f32)
            # denominator: per-head segment-sum of qf*ksum broadcast back to head lanes.
            # Both MXU operands are bf16 (no f32 multi-pass emulation).
            denom = jnp.dot((qf * ksum).astype(bf16), bd_mask_b,
                            preferred_element_type=f32) + ATTN_EPS
            attn = num * pl.reciprocal(denom, approx=True)
            attn_out = jnp.dot(attn.astype(bf16), wo_ref[...],
                               preferred_element_type=f32) + bo
            x1 = _layer_norm(x_c + attn_out, ln1w, ln1b)
            h1 = _gelu_tanh(jnp.dot(x1.astype(bf16), w1_ref[...],
                                    preferred_element_type=f32) + b1)
            y = jnp.dot(h1.astype(bf16), w2_ref[...],
                        preferred_element_type=f32) + b2
            x2 = _layer_norm(x1 + y, ln2w, ln2b)

            @pl.when(layer < n_layers - 1)
            def _():
                x_vmem[_b, pl.ds(off, chunk), :] = x2     # feed next layer (stays in VMEM)

            @pl.when(is_last)
            def _():
                # final encoder LayerNorm fused into the last layer step
                out_ref[_b, pl.ds(off, chunk), :] = _layer_norm(x2, lnf_w, lnf_b)


# ---------------------------------------------------------------------------
# host-side helpers
# ---------------------------------------------------------------------------
def _vmem_capacity_bytes(default=64 * 2 ** 20):
    """Physical VMEM per core; conservative 64 MiB (v7x) fallback if the query fails."""
    try:
        cap = getattr(pltpu.get_tpu_info(), "vmem_capacity_bytes", None)
        if cap:
            return int(cap)
    except Exception:
        pass
    return default


def _choose_chunk(L, target):
    """Chunk (multiple of 8) and padded length L_pad = chunk * n_chunks >= L."""
    n_chunks = max(1, -(-L // target))
    chunk = -(-L // n_chunks)
    chunk = ((chunk + 7) // 8) * 8
    return chunk, chunk * n_chunks


def _choose_batch_block(N, L_pad, D, F, chunk, per_layer_bytes, budget):
    """Largest sub-batch per grid step whose footprint fits the VMEM budget."""
    def footprint(bb):
        act = 5 * bb * L_pad * D * 4                  # x in (x2) + out (x2) + resident scratch
        tmp = (3 * D * D + 12 * chunk * D + 2 * chunk * F) * 4
        return 2 * per_layer_bytes + act + tmp + D * D * 4

    cands = [bb for bb in range(1, min(N, 8) + 1) if footprint(bb) <= budget]
    if not cands:
        return 1
    # minimize weight re-streaming (number of batch blocks), then padded waste, prefer larger bb
    return min(cands, key=lambda bb: ((N + bb - 1) // bb, ((N + bb - 1) // bb) * bb, -bb))


def fast_transformer_encoder_forward(src, src_key_padding_mask, params, nhead,
                                     *, q_chunk_target=512):
    assert src_key_padding_mask.shape == src.shape[:2]
    assert src_key_padding_mask.dtype == jnp.bool_
    N, L, D = src.shape
    assert D % nhead == 0
    nlayers = params["wq"].shape[0]
    F = params["w1"].shape[-1]
    chunk, L_pad = _choose_chunk(L, q_chunk_target)

    # LengthMask semantics: actual_len = L - num_paddings (padding contiguous at the end).
    lengths = (L - jnp.sum(src_key_padding_mask.astype(jnp.int32), axis=1)).astype(jnp.int32)

    # --- pack per-layer params: 6 bf16 weight matrices + 1 packed f32 vector table + b1 ---
    wq = params["wq"].astype(jnp.bfloat16)
    wk = params["wk"].astype(jnp.bfloat16)
    wv = params["wv"].astype(jnp.bfloat16)
    wo = params["wo"].astype(jnp.bfloat16)
    w1 = params["w1"].astype(jnp.bfloat16)
    w2 = params["w2"].astype(jnp.bfloat16)
    vecd = jnp.concatenate([params[k].astype(jnp.float32) for k in _VECD_ORDER], axis=1)
    b1 = params["b1"].astype(jnp.float32)
    lnfw = params["lnfw"].astype(jnp.float32)
    lnfb = params["lnfb"].astype(jnp.float32)

    # block-diagonal head mask built on the host, resident across all grid steps
    dk = D // nhead
    hid = jnp.arange(D, dtype=jnp.int32) // dk
    bd_mask = (hid[:, None] == hid[None, :]).astype(jnp.float32)

    # --- generation-aware VMEM budgeting: batch block and scoped limit ---
    cap = _vmem_capacity_bytes()
    stacked = (wq, wk, wv, wo, w1, w2, vecd, b1)
    per_layer_bytes = sum(int(a.size) * a.dtype.itemsize for a in stacked) // nlayers
    bb = _choose_batch_block(N, L_pad, D, F, chunk, per_layer_bytes, budget=int(cap * 0.60))
    NB = (N + bb - 1) // bb
    N_pad = NB * bb
    act_bytes = 5 * bb * L_pad * D * 4
    tmp_bytes = (3 * D * D + 12 * chunk * D + 2 * chunk * F) * 4
    est = 2 * per_layer_bytes + act_bytes + tmp_bytes + D * D * 4
    vmem_limit = int(min(max(est * 3 // 2, 32 * 2 ** 20), int(cap * 0.85)))

    # pad batch / sequence (padded rows have length 0 -> fully masked, sliced off at the end)
    x = jnp.zeros((N_pad, L_pad, D), jnp.float32).at[:N, :L, :].set(src.astype(jnp.float32))
    lens_pad = jnp.zeros((N_pad,), jnp.int32).at[:N].set(lengths)

    def _layer_spec(a):
        tail = a.shape[1:]
        zeros = (0,) * len(tail)
        return pl.BlockSpec((None,) + tail, lambda n, l, lens, _z=zeros: (l,) + _z)

    in_specs = (
        [pl.BlockSpec((bb, L_pad, D), lambda n, l, lens: (n, 0, 0))]      # x (read at layer 0)
        + [_layer_spec(a) for a in stacked]                               # per-layer params
        + [pl.BlockSpec((D, D), lambda n, l, lens: (0, 0)),               # head mask (resident)
           pl.BlockSpec((1, D), lambda n, l, lens: (0, 0)),               # final LN weight
           pl.BlockSpec((1, D), lambda n, l, lens: (0, 0))]               # final LN bias
    )
    out_spec = pl.BlockSpec((bb, L_pad, D), lambda n, l, lens: (n, 0, 0)) # resident over layers

    grid_spec = pltpu.PrefetchScalarGridSpec(
        num_scalar_prefetch=1,
        grid=(NB, nlayers),
        in_specs=in_specs,
        out_specs=out_spec,
        scratch_shapes=[pltpu.VMEM((bb, L_pad, D), jnp.float32)],
    )
    kernel = functools.partial(fused_encoder_kernel, chunk=chunk, batch_block=bb)
    out = pl.pallas_call(
        kernel,
        out_shape=jax.ShapeDtypeStruct((N_pad, L_pad, D), jnp.float32),
        grid_spec=grid_spec,
        compiler_params=pltpu.CompilerParams(
            dimension_semantics=("parallel", "arbitrary"),
            vmem_limit_bytes=vmem_limit),
    )(lens_pad, x, *stacked, bd_mask, lnfw, lnfb)
    return out[:N, :L, :]


# ---------------------------------------------------------------------------
# synthetic params + pure-JAX reference (for self-check)
# ---------------------------------------------------------------------------
def init_params(key, d_model, nhead, d_hid, nlayers):
    """Deterministic synthetic init. Linear weights stored (in, out) in bf16; biases / LN in f32."""
    D, F = d_model, d_hid
    s = 0.05
    cols = {k: [] for k in ("wq", "bq", "wk", "bk", "wv", "bv", "wo", "bo",
                            "w1", "b1", "w2", "b2")}
    for layer in range(nlayers):
        ks = jax.random.split(jax.random.fold_in(key, layer), 12)

        def W(i, shape):
            return s * jax.random.normal(ks[i], shape, jnp.float32)

        cols["wq"].append(W(0, (D, D)).astype(jnp.bfloat16)); cols["bq"].append(W(1, (1, D)))
        cols["wk"].append(W(2, (D, D)).astype(jnp.bfloat16)); cols["bk"].append(W(3, (1, D)))
        cols["wv"].append(W(4, (D, D)).astype(jnp.bfloat16)); cols["bv"].append(W(5, (1, D)))
        cols["wo"].append(W(6, (D, D)).astype(jnp.bfloat16)); cols["bo"].append(W(7, (1, D)))
        cols["w1"].append(W(8, (D, F)).astype(jnp.bfloat16)); cols["b1"].append(W(9, (1, F)))
        cols["w2"].append(W(10, (F, D)).astype(jnp.bfloat16)); cols["b2"].append(W(11, (1, D)))

    params = {k: jnp.stack(v, axis=0) for k, v in cols.items()}
    params.update({
        "ln1w": jnp.ones((nlayers, 1, D), jnp.float32),
        "ln1b": jnp.zeros((nlayers, 1, D), jnp.float32),
        "ln2w": jnp.ones((nlayers, 1, D), jnp.float32),
        "ln2b": jnp.zeros((nlayers, 1, D), jnp.float32),
        "lnfw": jnp.ones((1, D), jnp.float32),
        "lnfb": jnp.zeros((1, D), jnp.float32),
    })
    return params


def _reference_forward(src, mask, params, nhead):
    """Pure-JAX f32 reference of the fast_transformers linear-attention encoder (eval mode)."""
    N, L, D = src.shape
    nlayers = params["wq"].shape[0]
    dk = D // nhead
    lengths = L - jnp.sum(mask.astype(jnp.int32), axis=1)
    key_mask = (jnp.arange(L)[None, :] < lengths[:, None]).astype(jnp.float32)
    x = src.astype(jnp.float32)
    for l in range(nlayers):
        def lin(wk_, bk_, inp):
            return inp @ params[wk_][l].astype(jnp.float32) + params[bk_][l].astype(jnp.float32)
        q = lin("wq", "bq", x); k = lin("wk", "bk", x); v = lin("wv", "bv", x)
        Q = q.reshape(N, L, nhead, dk); K = k.reshape(N, L, nhead, dk); V = v.reshape(N, L, nhead, dk)
        Q = jnp.where(Q > 0, Q + 1.0, jnp.exp(Q))
        K = jnp.where(K > 0, K + 1.0, jnp.exp(K)) * key_mask[:, :, None, None]
        KV = jnp.einsum("nshd,nshm->nhdm", K, V)
        Z = 1.0 / (jnp.einsum("nlhd,nhd->nlh", Q, K.sum(axis=1)) + ATTN_EPS)
        attn = jnp.einsum("nlhd,nhdm,nlh->nlhm", Q, KV, Z).reshape(N, L, D)
        attn_out = attn @ params["wo"][l].astype(jnp.float32) + params["bo"][l]
        x1 = _layer_norm(x + attn_out, params["ln1w"][l], params["ln1b"][l])
        h = jax.nn.gelu(x1 @ params["w1"][l].astype(jnp.float32) + params["b1"][l],
                        approximate=False)
        y = h @ params["w2"][l].astype(jnp.float32) + params["b2"][l]
        x = _layer_norm(x1 + y, params["ln2w"][l], params["ln2b"][l])
    return _layer_norm(x, params["lnfw"], params["lnfb"])


if __name__ == "__main__":
    # small shapes consistent with the module: src [N, seq_len, d_model]
    N, L = 2, 8
    d_model, nhead, d_hid, nlayers = 32, 2, 64, 2

    key = jax.random.PRNGKey(0)
    k_x, k_p = jax.random.split(key)
    src = jax.random.normal(k_x, (N, L, d_model), jnp.float32)
    # padding only at the end (LengthMask compatibility, as validated by the torch module)
    src_key_padding_mask = jnp.zeros((N, L), dtype=jnp.bool_).at[1, L - 2:].set(True)

    params = init_params(k_p, d_model, nhead, d_hid, nlayers)

    out = fast_transformer_encoder_forward(src, src_key_padding_mask, params, nhead)
    out = jax.block_until_ready(out)
    assert out.shape == (N, L, d_model)
    assert bool(jnp.all(jnp.isfinite(out)))

    # loose sanity check vs the f32 reference (bf16 MXU / approx reciprocal / tanh-GELU drift)
    ref = _reference_forward(src, src_key_padding_mask, params, nhead)
    max_err = float(jnp.max(jnp.abs(out - ref)))
    assert max_err < 0.1, f"max abs error vs reference: {max_err}"
    print("KERNEL_OK")
</pallas_src>

<mosaic_0001>
module attributes {stable_mosaic.version = 11 : i64} {
  func.func @fused_encoder_kernel(%arg0: i32, %arg1: i32, %arg2: memref<2xi32, #tpu.memory_space<smem>>, %arg3: memref<2x8x32xf32, #tpu.memory_space<vmem>>, %arg4: memref<1x32x32xbf16, #tpu.memory_space<vmem>>, %arg5: memref<1x32x32xbf16, #tpu.memory_space<vmem>>, %arg6: memref<1x32x32xbf16, #tpu.memory_space<vmem>>, %arg7: memref<1x32x32xbf16, #tpu.memory_space<vmem>>, %arg8: memref<1x32x64xbf16, #tpu.memory_space<vmem>>, %arg9: memref<1x64x32xbf16, #tpu.memory_space<vmem>>, %arg10: memref<1x9x32xf32, #tpu.memory_space<vmem>>, %arg11: memref<1x1x64xf32, #tpu.memory_space<vmem>>, %arg12: memref<32x32xf32, #tpu.memory_space<vmem>>, %arg13: memref<1x32xf32, #tpu.memory_space<vmem>>, %arg14: memref<1x32xf32, #tpu.memory_space<vmem>>, %arg15: memref<2x8x32xf32, #tpu.memory_space<vmem>>, %arg16: memref<2x8x32xf32, #tpu.memory_space<vmem>>) attributes {dimension_semantics = [#tpu.dimension_semantics<parallel>, #tpu.dimension_semantics<arbitrary>], iteration_bounds = array<i64: 1, 2>, scalar_prefetch = 1 : i64, scratch_operands = 1 : i64, tpu.core_type = #tpu.core_type<tc>, window_params = [{transform_indices = @transform_0, window_bounds = array<i64: 2, 8, 32>}, {transform_indices = @transform_1, window_bounds = array<i64: 1, 32, 32>}, {transform_indices = @transform_2, window_bounds = array<i64: 1, 32, 32>}, {transform_indices = @transform_3, window_bounds = array<i64: 1, 32, 32>}, {transform_indices = @transform_4, window_bounds = array<i64: 1, 32, 32>}, {transform_indices = @transform_5, window_bounds = array<i64: 1, 32, 64>}, {transform_indices = @transform_6, window_bounds = array<i64: 1, 64, 32>}, {transform_indices = @transform_7, window_bounds = array<i64: 1, 9, 32>}, {transform_indices = @transform_8, window_bounds = array<i64: 1, 1, 64>}, {pipeline_mode = #tpu.pipeline_mode<synchronous>, transform_indices = @transform_9, window_bounds = array<i64: 32, 32>}, {pipeline_mode = #tpu.pipeline_mode<synchronous>, transform_indices = @transform_10, window_bounds = array<i64: 1, 32>}, {pipeline_mode = #tpu.pipeline_mode<synchronous>, transform_indices = @transform_11, window_bounds = array<i64: 1, 32>}, {transform_indices = @transform_12, window_bounds = array<i64: 2, 8, 32>}]} {
    %c0_i32 = arith.constant 0 : i32
    %0 = arith.cmpi eq, %arg1, %c0_i32 : i32
    %1 = arith.extui %0 : i1 to i32
    %c0_i32_0 = arith.constant 0 : i32
    %2 = arith.cmpi ne, %1, %c0_i32_0 : i32
    scf.if %2 {
      %c0_140 = arith.constant 0 : index
      %c0_141 = arith.constant 0 : index
      %c0_142 = arith.constant 0 : index
      %335 = vector.load %arg3[%c0_140, %c0_141, %c0_142] : memref<2x8x32xf32, #tpu.memory_space<vmem>>, vector<2x8x32xf32>
      %c0_143 = arith.constant 0 : index
      %c0_144 = arith.constant 0 : index
      %c0_145 = arith.constant 0 : index
      %336 = vector.load %arg16[%c0_143, %c0_144, %c0_145] : memref<2x8x32xf32, #tpu.memory_space<vmem>>, vector<2x8x32xf32>
      tpu.vector_store %arg16[%c0_143, %c0_144, %c0_145], %335 {strides = array<i32>} : memref<2x8x32xf32, #tpu.memory_space<vmem>>, vector<2x8x32xf32>,
    } else {
    }
    %c1_i32 = arith.constant 1 : i32
    %3 = arith.cmpi eq, %arg1, %c1_i32 : i32
    %c0 = arith.constant 0 : index
    %c0_1 = arith.constant 0 : index
    %c0_2 = arith.constant 0 : index
    %4 = vector.load %arg10[%c0, %c0_1, %c0_2] : memref<1x9x32xf32, #tpu.memory_space<vmem>>, vector<1x9x32xf32>
    %5 = vector.shape_cast %4 : vector<1x9x32xf32> to vector<9x32xf32>
    %6 = vector.extract_strided_slice %5 {offsets = [0, 0], sizes = [1, 32], strides = [1, 1]} : vector<9x32xf32> to vector<1x32xf32>
    %7 = vector.extract_strided_slice %5 {offsets = [1, 0], sizes = [1, 32], strides = [1, 1]} : vector<9x32xf32> to vector<1x32xf32>
    %8 = vector.extract_strided_slice %5 {offsets = [2, 0], sizes = [1, 32], strides = [1, 1]} : vector<9x32xf32> to vector<1x32xf32>
    %9 = vector.extract_strided_slice %5 {offsets = [3, 0], sizes = [1, 32], strides = [1, 1]} : vector<9x32xf32> to vector<1x32xf32>
    %10 = vector.extract_strided_slice %5 {offsets = [4, 0], sizes = [1, 32], strides = [1, 1]} : vector<9x32xf32> to vector<1x32xf32>
    %11 = vector.extract_strided_slice %5 {offsets = [5, 0], sizes = [1, 32], strides = [1, 1]} : vector<9x32xf32> to vector<1x32xf32>
    %12 = vector.extract_strided_slice %5 {offsets = [6, 0], sizes = [1, 32], strides = [1, 1]} : vector<9x32xf32> to vector<1x32xf32>
    %13 = vector.extract_strided_slice %5 {offsets = [7, 0], sizes = [1, 32], strides = [1, 1]} : vector<9x32xf32> to vector<1x32xf32>
    %14 = vector.extract_strided_slice %5 {offsets = [8, 0], sizes = [1, 32], strides = [1, 1]} : vector<9x32xf32> to vector<1x32xf32>
    %c0_3 = arith.constant 0 : index
    %c0_4 = arith.constant 0 : index
    %c0_5 = arith.constant 0 : index
    %15 = vector.load %arg11[%c0_3, %c0_4, %c0_5] : memref<1x1x64xf32, #tpu.memory_space<vmem>>, vector<1x1x64xf32>
    %16 = vector.shape_cast %15 : vector<1x1x64xf32> to vector<1x64xf32>
    %c0_6 = arith.constant 0 : index
    %c0_7 = arith.constant 0 : index
    %17 = vector.load %arg13[%c0_6, %c0_7] : memref<1x32xf32, #tpu.memory_space<vmem>>, vector<1x32xf32>
    %c0_8 = arith.constant 0 : index
    %c0_9 = arith.constant 0 : index
    %18 = vector.load %arg14[%c0_8, %c0_9] : memref<1x32xf32, #tpu.memory_space<vmem>>, vector<1x32xf32>
    %c0_10 = arith.constant 0 : index
    %c0_11 = arith.constant 0 : index
    %19 = vector.load %arg12[%c0_10, %c0_11] : memref<32x32xf32, #tpu.memory_space<vmem>>, vector<32x32xf32>
    %20 = arith.truncf %19 : vector<32x32xf32> to vector<32x32xbf16>
    %c2_i32 = arith.constant 2 : i32
    %21 = arith.muli %arg0, %c2_i32 : i32
    %c0_i32_12 = arith.constant 0 : i32
    %22 = arith.addi %21, %c0_i32_12 : i32
    %23 = arith.index_cast %22 : i32 to index
    %24 = memref.load %arg2[%23] : memref<2xi32, #tpu.memory_space<smem>>
    %cst = arith.constant 0.000000e+00 : f32
    %25 = vector.broadcast %cst : f32 to vector<32x32xf32>
    %cst_13 = arith.constant 0.000000e+00 : f32
    %26 = vector.broadcast %cst_13 : f32 to vector<1x32xf32>
    %c0_i32_14 = arith.constant 0 : i32
    %c8_i32 = arith.constant 8 : i32
    %27 = arith.muli %c0_i32_14, %c8_i32 : i32
    %28 = tpu.assume_multiple %27, 8 : i32
    %c0_15 = arith.constant 0 : index
    %29 = arith.index_cast %28 : i32 to index
    %c0_16 = arith.constant 0 : index
    %30 = vector.load %arg16[%c0_15, %29, %c0_16] : memref<2x8x32xf32, #tpu.memory_space<vmem>>, vector<1x8x32xf32>
    %31 = vector.shape_cast %30 : vector<1x8x32xf32> to vector<8x32xf32>
    %32 = arith.truncf %31 : vector<8x32xf32> to vector<8x32xbf16>
    %c0_17 = arith.constant 0 : index
    %c0_18 = arith.constant 0 : index
    %c0_19 = arith.constant 0 : index
    %33 = vector.load %arg5[%c0_17, %c0_18, %c0_19] : memref<1x32x32xbf16, #tpu.memory_space<vmem>>, vector<1x32x32xbf16>
    %34 = vector.shape_cast %33 : vector<1x32x32xbf16> to vector<32x32xbf16>
    %cst_20 = arith.constant dense<0.000000e+00> : vector<8x32xf32>
    %35 = tpu.matmul %32, %34, %cst_20 {dimension_numbers = #tpu.dot_dimension_numbers<[1], [0], [0], [1], [0, 0, 1, 1], [], []>} : vector<8x32xbf16>, vector<32x32xbf16>, vector<8x32xf32> -> vector<8x32xf32>
    %36 = vector.broadcast %7 : vector<1x32xf32> to vector<8x32xf32>
    %37 = arith.addf %35, %36 : vector<8x32xf32>
    %c0_21 = arith.constant 0 : index
    %c0_22 = arith.constant 0 : index
    %c0_23 = arith.constant 0 : index
    %38 = vector.load %arg6[%c0_21, %c0_22, %c0_23] : memref<1x32x32xbf16, #tpu.memory_space<vmem>>, vector<1x32x32xbf16>
    %39 = vector.shape_cast %38 : vector<1x32x32xbf16> to vector<32x32xbf16>
    %cst_24 = arith.constant dense<0.000000e+00> : vector<8x32xf32>
    %40 = tpu.matmul %32, %39, %cst_24 {dimension_numbers = #tpu.dot_dimension_numbers<[1], [0], [0], [1], [0, 0, 1, 1], [], []>} : vector<8x32xbf16>, vector<32x32xbf16>, vector<8x32xf32> -> vector<8x32xf32>
    %41 = vector.broadcast %8 : vector<1x32xf32> to vector<8x32xf32>
    %42 = arith.addf %40, %41 : vector<8x32xf32>
    %43 = tpu.iota {dimensions = array<i32: 0>} : vector<8x1xi32>
    %44 = vector.broadcast %28 : i32 to vector<8x1xi32>
    %45 = arith.addi %43, %44 : vector<8x1xi32>
    %46 = vector.broadcast %24 : i32 to vector<8x1xi32>
    %47 = arith.cmpi slt, %45, %46 : vector<8x1xi32>
    %48 = arith.extui %47 : vector<8x1xi1> to vector<8x1xi32>
    %49 = arith.sitofp %48 : vector<8x1xi32> to vector<8x1xf32>
    %cst_25 = arith.constant 0.000000e+00 : f32
    %50 = vector.broadcast %cst_25 : f32 to vector<8x32xf32>
    %51 = arith.cmpf ogt, %37, %50 : vector<8x32xf32>
    %cst_26 = arith.constant 1.000000e+00 : f32
    %52 = vector.broadcast %cst_26 : f32 to vector<8x32xf32>
    %53 = arith.addf %37, %52 : vector<8x32xf32>
    %54 = math.exp %37 : vector<8x32xf32>
    %55 = arith.select %51, %53, %54 : vector<8x32xi1>, vector<8x32xf32>
    %56 = vector.broadcast %49 : vector<8x1xf32> to vector<8x32xf32>
    %57 = arith.mulf %55, %56 : vector<8x32xf32>
    %58 = arith.truncf %57 : vector<8x32xf32> to vector<8x32xbf16>
    %59 = arith.truncf %42 : vector<8x32xf32> to vector<8x32xbf16>
    %cst_27 = arith.constant dense<0.000000e+00> : vector<32x32xf32>
    %60 = tpu.matmul %58, %59, %cst_27 {dimension_numbers = #tpu.dot_dimension_numbers<[0], [0], [1], [1], [0, 1, 1, 1], [], []>} : vector<8x32xbf16>, vector<8x32xbf16>, vector<32x32xf32> -> vector<32x32xf32>
    %61 = arith.addf %25, %60 : vector<32x32xf32>
    %cst_28 = arith.constant dense<0.000000e+00> : vector<32xf32>
    %62 = vector.multi_reduction <add>, %57, %cst_28 [0] : vector<8x32xf32> to vector<32xf32>
    %63 = vector.shape_cast %62 : vector<32xf32> to vector<1x32xf32>
    %64 = arith.addf %26, %63 : vector<1x32xf32>
    %c1_i32_29 = arith.constant 1 : i32
    %65 = arith.mulf %61, %19 : vector<32x32xf32>
    %66 = arith.truncf %65 : vector<32x32xf32> to vector<32x32xbf16>
    %c0_i32_30 = arith.constant 0 : i32
    %c1_i32_31 = arith.constant 1 : i32
    %67 = arith.muli %c0_i32_30, %c1_i32_31 : i32
    %c0_i32_32 = arith.constant 0 : i32
    %68 = arith.addi %c0_i32_32, %67 : i32
    %c8_i32_33 = arith.constant 8 : i32
    %69 = arith.muli %68, %c8_i32_33 : i32
    %70 = tpu.assume_multiple %69, 8 : i32
    %c0_34 = arith.constant 0 : index
    %71 = arith.index_cast %70 : i32 to index
    %c0_35 = arith.constant 0 : index
    %72 = vector.load %arg16[%c0_34, %71, %c0_35] : memref<2x8x32xf32, #tpu.memory_space<vmem>>, vector<1x8x32xf32>
    %73 = vector.shape_cast %72 : vector<1x8x32xf32> to vector<8x32xf32>
    %74 = arith.truncf %73 : vector<8x32xf32> to vector<8x32xbf16>
    %c0_36 = arith.constant 0 : index
    %c0_37 = arith.constant 0 : index
    %c0_38 = arith.constant 0 : index
    %75 = vector.load %arg4[%c0_36, %c0_37, %c0_38] : memref<1x32x32xbf16, #tpu.memory_space<vmem>>, vector<1x32x32xbf16>
    %76 = vector.shape_cast %75 : vector<1x32x32xbf16> to vector<32x32xbf16>
    %cst_39 = arith.constant dense<0.000000e+00> : vector<8x32xf32>
    %77 = tpu.matmul %74, %76, %cst_39 {dimension_numbers = #tpu.dot_dimension_numbers<[1], [0], [0], [1], [0, 0, 1, 1], [], []>} : vector<8x32xbf16>, vector<32x32xbf16>, vector<8x32xf32> -> vector<8x32xf32>
    %78 = vector.broadcast %6 : vector<1x32xf32> to vector<8x32xf32>
    %79 = arith.addf %77, %78 : vector<8x32xf32>
    %cst_40 = arith.constant 0.000000e+00 : f32
    %80 = vector.broadcast %cst_40 : f32 to vector<8x32xf32>
    %81 = arith.cmpf ogt, %79, %80 : vector<8x32xf32>
    %cst_41 = arith.constant 1.000000e+00 : f32
    %82 = vector.broadcast %cst_41 : f32 to vector<8x32xf32>
    %83 = arith.addf %79, %82 : vector<8x32xf32>
    %84 = math.exp %79 : vector<8x32xf32>
    %85 = arith.select %81, %83, %84 : vector<8x32xi1>, vector<8x32xf32>
    %86 = arith.truncf %85 : vector<8x32xf32> to vector<8x32xbf16>
    %cst_42 = arith.constant dense<0.000000e+00> : vector<8x32xf32>
    %87 = tpu.matmul %86, %66, %cst_42 {dimension_numbers = #tpu.dot_dimension_numbers<[1], [0], [0], [1], [0, 0, 1, 1], [], []>} : vector<8x32xbf16>, vector<32x32xbf16>, vector<8x32xf32> -> vector<8x32xf32>
    %88 = vector.broadcast %64 : vector<1x32xf32> to vector<8x32xf32>
    %89 = arith.mulf %85, %88 : vector<8x32xf32>
    %90 = arith.truncf %89 : vector<8x32xf32> to vector<8x32xbf16>
    %cst_43 = arith.constant dense<0.000000e+00> : vector<8x32xf32>
    %91 = tpu.matmul %90, %20, %cst_43 {dimension_numbers = #tpu.dot_dimension_numbers<[1], [0], [0], [1], [0, 0, 1, 1], [], []>} : vector<8x32xbf16>, vector<32x32xbf16>, vector<8x32xf32> -> vector<8x32xf32>
    %cst_44 = arith.constant 9.99999997E-7 : f32
    %92 = vector.broadcast %cst_44 : f32 to vector<8x32xf32>
    %93 = arith.addf %91, %92 : vector<8x32xf32>
    %94 = tpu.reciprocal %93 {approx = true} : vector<8x32xf32> -> vector<8x32xf32>
    %95 = arith.mulf %87, %94 : vector<8x32xf32>
    %96 = arith.truncf %95 : vector<8x32xf32> to vector<8x32xbf16>
    %c0_45 = arith.constant 0 : index
    %c0_46 = arith.constant 0 : index
    %c0_47 = arith.constant 0 : index
    %97 = vector.load %arg7[%c0_45, %c0_46, %c0_47] : memref<1x32x32xbf16, #tpu.memory_space<vmem>>, vector<1x32x32xbf16>
    %98 = vector.shape_cast %97 : vector<1x32x32xbf16> to vector<32x32xbf16>
    %cst_48 = arith.constant dense<0.000000e+00> : vector<8x32xf32>
    %99 = tpu.matmul %96, %98, %cst_48 {dimension_numbers = #tpu.dot_dimension_numbers<[1], [0], [0], [1], [0, 0, 1, 1], [], []>} : vector<8x32xbf16>, vector<32x32xbf16>, vector<8x32xf32> -> vector<8x32xf32>
    %100 = vector.broadcast %9 : vector<1x32xf32> to vector<8x32xf32>
    %101 = arith.addf %99, %100 : vector<8x32xf32>
    %102 = arith.addf %73, %101 : vector<8x32xf32>
    %cst_49 = arith.constant dense<0.000000e+00> : vector<8xf32>
    %103 = vector.multi_reduction <add>, %102, %cst_49 [1] : vector<8x32xf32> to vector<8xf32>
    %104 = vector.shape_cast %103 : vector<8xf32> to vector<8x1xf32>
    %cst_50 = arith.constant 3.200000e+01 : f32
    %105 = vector.broadcast %cst_50 : f32 to vector<8x1xf32>
    %106 = arith.divf %104, %105 : vector<8x1xf32>
    %107 = vector.broadcast %106 : vector<8x1xf32> to vector<8x32xf32>
    %108 = arith.subf %102, %107 : vector<8x32xf32>
    %109 = arith.mulf %108, %108 : vector<8x32xf32>
    %cst_51 = arith.constant dense<0.000000e+00> : vector<8xf32>
    %110 = vector.multi_reduction <add>, %109, %cst_51 [1] : vector<8x32xf32> to vector<8xf32>
    %111 = vector.shape_cast %110 : vector<8xf32> to vector<8x1xf32>
    %cst_52 = arith.constant 3.200000e+01 : f32
    %112 = vector.broadcast %cst_52 : f32 to vector<8x1xf32>
    %113 = arith.divf %111, %112 : vector<8x1xf32>
    %114 = vector.broadcast %106 : vector<8x1xf32> to vector<8x32xf32>
    %115 = arith.subf %102, %114 : vector<8x32xf32>
    %cst_53 = arith.constant 9.99999974E-6 : f32
    %116 = vector.broadcast %cst_53 : f32 to vector<8x1xf32>
    %117 = arith.addf %113, %116 : vector<8x1xf32>
    %118 = math.rsqrt %117 : vector<8x1xf32>
    %119 = vector.broadcast %118 : vector<8x1xf32> to vector<8x32xf32>
    %120 = arith.mulf %115, %119 : vector<8x32xf32>
    %121 = vector.broadcast %10 : vector<1x32xf32> to vector<8x32xf32>
    %122 = arith.mulf %120, %121 : vector<8x32xf32>
    %123 = vector.broadcast %11 : vector<1x32xf32> to vector<8x32xf32>
    %124 = arith.addf %122, %123 : vector<8x32xf32>
    %125 = arith.truncf %124 : vector<8x32xf32> to vector<8x32xbf16>
    %c0_54 = arith.constant 0 : index
    %c0_55 = arith.constant 0 : index
    %c0_56 = arith.constant 0 : index
    %126 = vector.load %arg8[%c0_54, %c0_55, %c0_56] : memref<1x32x64xbf16, #tpu.memory_space<vmem>>, vector<1x32x64xbf16>
    %127 = vector.shape_cast %126 : vector<1x32x64xbf16> to vector<32x64xbf16>
    %cst_57 = arith.constant dense<0.000000e+00> : vector<8x64xf32>
    %128 = tpu.matmul %125, %127, %cst_57 {dimension_numbers = #tpu.dot_dimension_numbers<[1], [0], [0], [1], [0, 0, 1, 1], [], []>} : vector<8x32xbf16>, vector<32x64xbf16>, vector<8x64xf32> -> vector<8x64xf32>
    %129 = vector.broadcast %16 : vector<1x64xf32> to vector<8x64xf32>
    %130 = arith.addf %128, %129 : vector<8x64xf32>
    %cst_58 = arith.constant 5.000000e-01 : f32
    %131 = vector.broadcast %cst_58 : f32 to vector<8x64xf32>
    %132 = arith.mulf %131, %130 : vector<8x64xf32>
    %cst_59 = arith.constant 4.471500e-02 : f32
    %133 = vector.broadcast %cst_59 : f32 to vector<8x64xf32>
    %134 = arith.mulf %133, %130 : vector<8x64xf32>
    %135 = arith.mulf %134, %130 : vector<8x64xf32>
    %136 = arith.mulf %135, %130 : vector<8x64xf32>
    %137 = arith.addf %130, %136 : vector<8x64xf32>
    %cst_60 = arith.constant 0.797884583 : f32
    %138 = vector.broadcast %cst_60 : f32 to vector<8x64xf32>
    %139 = arith.mulf %138, %137 : vector<8x64xf32>
    %140 = math.tanh %139 : vector<8x64xf32>
    %cst_61 = arith.constant 1.000000e+00 : f32
    %141 = vector.broadcast %cst_61 : f32 to vector<8x64xf32>
    %142 = arith.addf %141, %140 : vector<8x64xf32>
    %143 = arith.mulf %132, %142 : vector<8x64xf32>
    %144 = arith.truncf %143 : vector<8x64xf32> to vector<8x64xbf16>
    %c0_62 = arith.constant 0 : index
    %c0_63 = arith.constant 0 : index
    %c0_64 = arith.constant 0 : index
    %145 = vector.load %arg9[%c0_62, %c0_63, %c0_64] : memref<1x64x32xbf16, #tpu.memory_space<vmem>>, vector<1x64x32xbf16>
    %146 = vector.shape_cast %145 : vector<1x64x32xbf16> to vector<64x32xbf16>
    %cst_65 = arith.constant dense<0.000000e+00> : vector<8x32xf32>
    %147 = tpu.matmul %144, %146, %cst_65 {dimension_numbers = #tpu.dot_dimension_numbers<[1], [0], [0], [1], [0, 0, 1, 1], [], []>} : vector<8x64xbf16>, vector<64x32xbf16>, vector<8x32xf32> -> vector<8x32xf32>
    %148 = vector.broadcast %12 : vector<1x32xf32> to vector<8x32xf32>
    %149 = arith.addf %147, %148 : vector<8x32xf32>
    %150 = arith.addf %124, %149 : vector<8x32xf32>
    %cst_66 = arith.constant dense<0.000000e+00> : vector<8xf32>
    %151 = vector.multi_reduction <add>, %150, %cst_66 [1] : vector<8x32xf32> to vector<8xf32>
    %152 = vector.shape_cast %151 : vector<8xf32> to vector<8x1xf32>
    %cst_67 = arith.constant 3.200000e+01 : f32
    %153 = vector.broadcast %cst_67 : f32 to vector<8x1xf32>
    %154 = arith.divf %152, %153 : vector<8x1xf32>
    %155 = vector.broadcast %154 : vector<8x1xf32> to vector<8x32xf32>
    %156 = arith.subf %150, %155 : vector<8x32xf32>
    %157 = arith.mulf %156, %156 : vector<8x32xf32>
    %cst_68 = arith.constant dense<0.000000e+00> : vector<8xf32>
    %158 = vector.multi_reduction <add>, %157, %cst_68 [1] : vector<8x32xf32> to vector<8xf32>
    %159 = vector.shape_cast %158 : vector<8xf32> to vector<8x1xf32>
    %cst_69 = arith.constant 3.200000e+01 : f32
    %160 = vector.broadcast %cst_69 : f32 to vector<8x1xf32>
    %161 = arith.divf %159, %160 : vector<8x1xf32>
    %162 = vector.broadcast %154 : vector<8x1xf32> to vector<8x32xf32>
    %163 = arith.subf %150, %162 : vector<8x32xf32>
    %cst_70 = arith.constant 9.99999974E-6 : f32
    %164 = vector.broadcast %cst_70 : f32 to vector<8x1xf32>
    %165 = arith.addf %161, %164 : vector<8x1xf32>
    %166 = math.rsqrt %165 : vector<8x1xf32>
    %167 = vector.broadcast %166 : vector<8x1xf32> to vector<8x32xf32>
    %168 = arith.mulf %163, %167 : vector<8x32xf32>
    %169 = vector.broadcast %13 : vector<1x32xf32> to vector<8x32xf32>
    %170 = arith.mulf %168, %169 : vector<8x32xf32>
    %171 = vector.broadcast %14 : vector<1x32xf32> to vector<8x32xf32>
    %172 = arith.addf %170, %171 : vector<8x32xf32>
    %c1_i32_71 = arith.constant 1 : i32
    %173 = arith.cmpi slt, %arg1, %c1_i32_71 : i32
    %174 = arith.extui %173 : i1 to i32
    %c0_i32_72 = arith.constant 0 : i32
    %175 = arith.cmpi ne, %174, %c0_i32_72 : i32
    scf.if %175 {
      %c0_140 = arith.constant 0 : index
      %335 = arith.index_cast %70 : i32 to index
      %c0_141 = arith.constant 0 : index
      %336 = vector.load %arg16[%c0_140, %335, %c0_141] : memref<2x8x32xf32, #tpu.memory_space<vmem>>, vector<1x8x32xf32>
      %337 = vector.shape_cast %336 : vector<1x8x32xf32> to vector<8x32xf32>
      %338 = vector.shape_cast %172 : vector<8x32xf32> to vector<1x8x32xf32>
      tpu.vector_store %arg16[%c0_140, %335, %c0_141], %338 {strides = array<i32>} : memref<2x8x32xf32, #tpu.memory_space<vmem>>, vector<1x8x32xf32>,
    } else {
    }
    %176 = arith.extui %3 : i1 to i32
    %c0_i32_73 = arith.constant 0 : i32
    %177 = arith.cmpi ne, %176, %c0_i32_73 : i32
    scf.if %177 {
      %cst_140 = arith.constant dense<0.000000e+00> : vector<8xf32>
      %335 = vector.multi_reduction <add>, %172, %cst_140 [1] : vector<8x32xf32> to vector<8xf32>
      %336 = vector.shape_cast %335 : vector<8xf32> to vector<8x1xf32>
      %cst_141 = arith.constant 3.200000e+01 : f32
      %337 = vector.broadcast %cst_141 : f32 to vector<8x1xf32>
      %338 = arith.divf %336, %337 : vector<8x1xf32>
      %339 = vector.broadcast %338 : vector<8x1xf32> to vector<8x32xf32>
      %340 = arith.subf %172, %339 : vector<8x32xf32>
      %341 = arith.mulf %340, %340 : vector<8x32xf32>
      %cst_142 = arith.constant dense<0.000000e+00> : vector<8xf32>
      %342 = vector.multi_reduction <add>, %341, %cst_142 [1] : vector<8x32xf32> to vector<8xf32>
      %343 = vector.shape_cast %342 : vector<8xf32> to vector<8x1xf32>
      %cst_143 = arith.constant 3.200000e+01 : f32
      %344 = vector.broadcast %cst_143 : f32 to vector<8x1xf32>
      %345 = arith.divf %343, %344 : vector<8x1xf32>
      %346 = vector.broadcast %338 : vector<8x1xf32> to vector<8x32xf32>
      %347 = arith.subf %172, %346 : vector<8x32xf32>
      %cst_144 = arith.constant 9.99999974E-6 : f32
      %348 = vector.broadcast %cst_144 : f32 to vector<8x1xf32>
      %349 = arith.addf %345, %348 : vector<8x1xf32>
      %350 = math.rsqrt %349 : vector<8x1xf32>
      %351 = vector.broadcast %350 : vector<8x1xf32> to vector<8x32xf32>
      %352 = arith.mulf %347, %351 : vector<8x32xf32>
      %353 = vector.broadcast %17 : vector<1x32xf32> to vector<8x32xf32>
      %354 = arith.mulf %352, %353 : vector<8x32xf32>
      %355 = vector.broadcast %18 : vector<1x32xf32> to vector<8x32xf32>
      %356 = arith.addf %354, %355 : vector<8x32xf32>
      %c0_145 = arith.constant 0 : index
      %357 = arith.index_cast %70 : i32 to index
      %c0_146 = arith.constant 0 : index
      %358 = vector.load %arg15[%c0_145, %357, %c0_146] : memref<2x8x32xf32, #tpu.memory_space<vmem>>, vector<1x8x32xf32>
      %359 = vector.shape_cast %358 : vector<1x8x32xf32> to vector<8x32xf32>
      %360 = vector.shape_cast %356 : vector<8x32xf32> to vector<1x8x32xf32>
      tpu.vector_store %arg15[%c0_145, %357, %c0_146], %360 {strides = array<i32>} : memref<2x8x32xf32, #tpu.memory_space<vmem>>, vector<1x8x32xf32>,
    } else {
    }
    %c1_i32_74 = arith.constant 1 : i32
    %c2_i32_75 = arith.constant 2 : i32
    %178 = arith.muli %arg0, %c2_i32_75 : i32
    %c1_i32_76 = arith.constant 1 : i32
    %179 = arith.addi %178, %c1_i32_76 : i32
    %180 = arith.index_cast %179 : i32 to index
    %181 = memref.load %arg2[%180] : memref<2xi32, #tpu.memory_space<smem>>
    %cst_77 = arith.constant 0.000000e+00 : f32
    %182 = vector.broadcast %cst_77 : f32 to vector<32x32xf32>
    %cst_78 = arith.constant 0.000000e+00 : f32
    %183 = vector.broadcast %cst_78 : f32 to vector<1x32xf32>
    %c0_i32_79 = arith.constant 0 : i32
    %c8_i32_80 = arith.constant 8 : i32
    %184 = arith.muli %c0_i32_79, %c8_i32_80 : i32
    %185 = tpu.assume_multiple %184, 8 : i32
    %c1 = arith.constant 1 : index
    %186 = arith.index_cast %185 : i32 to index
    %c0_81 = arith.constant 0 : index
    %187 = vector.load %arg16[%c1, %186, %c0_81] : memref<2x8x32xf32, #tpu.memory_space<vmem>>, vector<1x8x32xf32>
    %188 = vector.shape_cast %187 : vector<1x8x32xf32> to vector<8x32xf32>
    %189 = arith.truncf %188 : vector<8x32xf32> to vector<8x32xbf16>
    %c0_82 = arith.constant 0 : index
    %c0_83 = arith.constant 0 : index
    %c0_84 = arith.constant 0 : index
    %190 = vector.load %arg5[%c0_82, %c0_83, %c0_84] : memref<1x32x32xbf16, #tpu.memory_space<vmem>>, vector<1x32x32xbf16>
    %191 = vector.shape_cast %190 : vector<1x32x32xbf16> to vector<32x32xbf16>
    %cst_85 = arith.constant dense<0.000000e+00> : vector<8x32xf32>
    %192 = tpu.matmul %189, %191, %cst_85 {dimension_numbers = #tpu.dot_dimension_numbers<[1], [0], [0], [1], [0, 0, 1, 1], [], []>} : vector<8x32xbf16>, vector<32x32xbf16>, vector<8x32xf32> -> vector<8x32xf32>
    %193 = vector.broadcast %7 : vector<1x32xf32> to vector<8x32xf32>
    %194 = arith.addf %192, %193 : vector<8x32xf32>
    %c0_86 = arith.constant 0 : index
    %c0_87 = arith.constant 0 : index
    %c0_88 = arith.constant 0 : index
    %195 = vector.load %arg6[%c0_86, %c0_87, %c0_88] : memref<1x32x32xbf16, #tpu.memory_space<vmem>>, vector<1x32x32xbf16>
    %196 = vector.shape_cast %195 : vector<1x32x32xbf16> to vector<32x32xbf16>
    %cst_89 = arith.constant dense<0.000000e+00> : vector<8x32xf32>
    %197 = tpu.matmul %189, %196, %cst_89 {dimension_numbers = #tpu.dot_dimension_numbers<[1], [0], [0], [1], [0, 0, 1, 1], [], []>} : vector<8x32xbf16>, vector<32x32xbf16>, vector<8x32xf32> -> vector<8x32xf32>
    %198 = vector.broadcast %8 : vector<1x32xf32> to vector<8x32xf32>
    %199 = arith.addf %197, %198 : vector<8x32xf32>
    %200 = tpu.iota {dimensions = array<i32: 0>} : vector<8x1xi32>
    %201 = vector.broadcast %185 : i32 to vector<8x1xi32>
    %202 = arith.addi %200, %201 : vector<8x1xi32>
    %203 = vector.broadcast %181 : i32 to vector<8x1xi32>
    %204 = arith.cmpi slt, %202, %203 : vector<8x1xi32>
    %205 = arith.extui %204 : vector<8x1xi1> to vector<8x1xi32>
    %206 = arith.sitofp %205 : vector<8x1xi32> to vector<8x1xf32>
    %cst_90 = arith.constant 0.000000e+00 : f32
    %207 = vector.broadcast %cst_90 : f32 to vector<8x32xf32>
    %208 = arith.cmpf ogt, %194, %207 : vector<8x32xf32>
    %cst_91 = arith.constant 1.000000e+00 : f32
    %209 = vector.broadcast %cst_91 : f32 to vector<8x32xf32>
    %210 = arith.addf %194, %209 : vector<8x32xf32>
    %211 = math.exp %194 : vector<8x32xf32>
    %212 = arith.select %208, %210, %211 : vector<8x32xi1>, vector<8x32xf32>
    %213 = vector.broadcast %206 : vector<8x1xf32> to vector<8x32xf32>
    %214 = arith.mulf %212, %213 : vector<8x32xf32>
    %215 = arith.truncf %214 : vector<8x32xf32> to vector<8x32xbf16>
    %216 = arith.truncf %199 : vector<8x32xf32> to vector<8x32xbf16>
    %cst_92 = arith.constant dense<0.000000e+00> : vector<32x32xf32>
    %217 = tpu.matmul %215, %216, %cst_92 {dimension_numbers = #tpu.dot_dimension_numbers<[0], [0], [1], [1], [0, 1, 1, 1], [], []>} : vector<8x32xbf16>, vector<8x32xbf16>, vector<32x32xf32> -> vector<32x32xf32>
    %218 = arith.addf %182, %217 : vector<32x32xf32>
    %cst_93 = arith.constant dense<0.000000e+00> : vector<32xf32>
    %219 = vector.multi_reduction <add>, %214, %cst_93 [0] : vector<8x32xf32> to vector<32xf32>
    %220 = vector.shape_cast %219 : vector<32xf32> to vector<1x32xf32>
    %221 = arith.addf %183, %220 : vector<1x32xf32>
    %c1_i32_94 = arith.constant 1 : i32
    %222 = arith.mulf %218, %19 : vector<32x32xf32>
    %223 = arith.truncf %222 : vector<32x32xf32> to vector<32x32xbf16>
    %c0_i32_95 = arith.constant 0 : i32
    %c1_i32_96 = arith.constant 1 : i32
    %224 = arith.muli %c0_i32_95, %c1_i32_96 : i32
    %c0_i32_97 = arith.constant 0 : i32
    %225 = arith.addi %c0_i32_97, %224 : i32
    %c8_i32_98 = arith.constant 8 : i32
    %226 = arith.muli %225, %c8_i32_98 : i32
    %227 = tpu.assume_multiple %226, 8 : i32
    %c1_99 = arith.constant 1 : index
    %228 = arith.index_cast %227 : i32 to index
    %c0_100 = arith.constant 0 : index
    %229 = vector.load %arg16[%c1_99, %228, %c0_100] : memref<2x8x32xf32, #tpu.memory_space<vmem>>, vector<1x8x32xf32>
    %230 = vector.shape_cast %229 : vector<1x8x32xf32> to vector<8x32xf32>
    %231 = arith.truncf %230 : vector<8x32xf32> to vector<8x32xbf16>
    %c0_101 = arith.constant 0 : index
    %c0_102 = arith.constant 0 : index
    %c0_103 = arith.constant 0 : index
    %232 = vector.load %arg4[%c0_101, %c0_102, %c0_103] : memref<1x32x32xbf16, #tpu.memory_space<vmem>>, vector<1x32x32xbf16>
    %233 = vector.shape_cast %232 : vector<1x32x32xbf16> to vector<32x32xbf16>
    %cst_104 = arith.constant dense<0.000000e+00> : vector<8x32xf32>
    %234 = tpu.matmul %231, %233, %cst_104 {dimension_numbers = #tpu.dot_dimension_numbers<[1], [0], [0], [1], [0, 0, 1, 1], [], []>} : vector<8x32xbf16>, vector<32x32xbf16>, vector<8x32xf32> -> vector<8x32xf32>
    %235 = vector.broadcast %6 : vector<1x32xf32> to vector<8x32xf32>
    %236 = arith.addf %234, %235 : vector<8x32xf32>
    %cst_105 = arith.constant 0.000000e+00 : f32
    %237 = vector.broadcast %cst_105 : f32 to vector<8x32xf32>
    %238 = arith.cmpf ogt, %236, %237 : vector<8x32xf32>
    %cst_106 = arith.constant 1.000000e+00 : f32
    %239 = vector.broadcast %cst_106 : f32 to vector<8x32xf32>
    %240 = arith.addf %236, %239 : vector<8x32xf32>
    %241 = math.exp %236 : vector<8x32xf32>
    %242 = arith.select %238, %240, %241 : vector<8x32xi1>, vector<8x32xf32>
    %243 = arith.truncf %242 : vector<8x32xf32> to vector<8x32xbf16>
    %cst_107 = arith.constant dense<0.000000e+00> : vector<8x32xf32>
    %244 = tpu.matmul %243, %223, %cst_107 {dimension_numbers = #tpu.dot_dimension_numbers<[1], [0], [0], [1], [0, 0, 1, 1], [], []>} : vector<8x32xbf16>, vector<32x32xbf16>, vector<8x32xf32> -> vector<8x32xf32>
    %245 = vector.broadcast %221 : vector<1x32xf32> to vector<8x32xf32>
    %246 = arith.mulf %242, %245 : vector<8x32xf32>
    %247 = arith.truncf %246 : vector<8x32xf32> to vector<8x32xbf16>
    %cst_108 = arith.constant dense<0.000000e+00> : vector<8x32xf32>
    %248 = tpu.matmul %247, %20, %cst_108 {dimension_numbers = #tpu.dot_dimension_numbers<[1], [0], [0], [1], [0, 0, 1, 1], [], []>} : vector<8x32xbf16>, vector<32x32xbf16>, vector<8x32xf32> -> vector<8x32xf32>
    %cst_109 = arith.constant 9.99999997E-7 : f32
    %249 = vector.broadcast %cst_109 : f32 to vector<8x32xf32>
    %250 = arith.addf %248, %249 : vector<8x32xf32>
    %251 = tpu.reciprocal %250 {approx = true} : vector<8x32xf32> -> vector<8x32xf32>
    %252 = arith.mulf %244, %251 : vector<8x32xf32>
    %253 = arith.truncf %252 : vector<8x32xf32> to vector<8x32xbf16>
    %c0_110 = arith.constant 0 : index
    %c0_111 = arith.constant 0 : index
    %c0_112 = arith.constant 0 : index
    %254 = vector.load %arg7[%c0_110, %c0_111, %c0_112] : memref<1x32x32xbf16, #tpu.memory_space<vmem>>, vector<1x32x32xbf16>
    %255 = vector.shape_cast %254 : vector<1x32x32xbf16> to vector<32x32xbf16>
    %cst_113 = arith.constant dense<0.000000e+00> : vector<8x32xf32>
    %256 = tpu.matmul %253, %255, %cst_113 {dimension_numbers = #tpu.dot_dimension_numbers<[1], [0], [0], [1], [0, 0, 1, 1], [], []>} : vector<8x32xbf16>, vector<32x32xbf16>, vector<8x32xf32> -> vector<8x32xf32>
    %257 = vector.broadcast %9 : vector<1x32xf32> to vector<8x32xf32>
    %258 = arith.addf %256, %257 : vector<8x32xf32>
    %259 = arith.addf %230, %258 : vector<8x32xf32>
    %cst_114 = arith.constant dense<0.000000e+00> : vector<8xf32>
    %260 = vector.multi_reduction <add>, %259, %cst_114 [1] : vector<8x32xf32> to vector<8xf32>
    %261 = vector.shape_cast %260 : vector<8xf32> to vector<8x1xf32>
    %cst_115 = arith.constant 3.200000e+01 : f32
    %262 = vector.broadcast %cst_115 : f32 to vector<8x1xf32>
    %263 = arith.divf %261, %262 : vector<8x1xf32>
    %264 = vector.broadcast %263 : vector<8x1xf32> to vector<8x32xf32>
    %265 = arith.subf %259, %264 : vector<8x32xf32>
    %266 = arith.mulf %265, %265 : vector<8x32xf32>
    %cst_116 = arith.constant dense<0.000000e+00> : vector<8xf32>
    %267 = vector.multi_reduction <add>, %266, %cst_116 [1] : vector<8x32xf32> to vector<8xf32>
    %268 = vector.shape_cast %267 : vector<8xf32> to vector<8x1xf32>
    %cst_117 = arith.constant 3.200000e+01 : f32
    %269 = vector.broadcast %cst_117 : f32 to vector<8x1xf32>
    %270 = arith.divf %268, %269 : vector<8x1xf32>
    %271 = vector.broadcast %263 : vector<8x1xf32> to vector<8x32xf32>
    %272 = arith.subf %259, %271 : vector<8x32xf32>
    %cst_118 = arith.constant 9.99999974E-6 : f32
    %273 = vector.broadcast %cst_118 : f32 to vector<8x1xf32>
    %274 = arith.addf %270, %273 : vector<8x1xf32>
    %275 = math.rsqrt %274 : vector<8x1xf32>
    %276 = vector.broadcast %275 : vector<8x1xf32> to vector<8x32xf32>
    %277 = arith.mulf %272, %276 : vector<8x32xf32>
    %278 = vector.broadcast %10 : vector<1x32xf32> to vector<8x32xf32>
    %279 = arith.mulf %277, %278 : vector<8x32xf32>
    %280 = vector.broadcast %11 : vector<1x32xf32> to vector<8x32xf32>
    %281 = arith.addf %279, %280 : vector<8x32xf32>
    %282 = arith.truncf %281 : vector<8x32xf32> to vector<8x32xbf16>
    %c0_119 = arith.constant 0 : index
    %c0_120 = arith.constant 0 : index
    %c0_121 = arith.constant 0 : index
    %283 = vector.load %arg8[%c0_119, %c0_120, %c0_121] : memref<1x32x64xbf16, #tpu.memory_space<vmem>>, vector<1x32x64xbf16>
    %284 = vector.shape_cast %283 : vector<1x32x64xbf16> to vector<32x64xbf16>
    %cst_122 = arith.constant dense<0.000000e+00> : vector<8x64xf32>
    %285 = tpu.matmul %282, %284, %cst_122 {dimension_numbers = #tpu.dot_dimension_numbers<[1], [0], [0], [1], [0, 0, 1, 1], [], []>} : vector<8x32xbf16>, vector<32x64xbf16>, vector<8x64xf32> -> vector<8x64xf32>
    %286 = vector.broadcast %16 : vector<1x64xf32> to vector<8x64xf32>
    %287 = arith.addf %285, %286 : vector<8x64xf32>
    %cst_123 = arith.constant 5.000000e-01 : f32
    %288 = vector.broadcast %cst_123 : f32 to vector<8x64xf32>
    %289 = arith.mulf %288, %287 : vector<8x64xf32>
    %cst_124 = arith.constant 4.471500e-02 : f32
    %290 = vector.broadcast %cst_124 : f32 to vector<8x64xf32>
    %291 = arith.mulf %290, %287 : vector<8x64xf32>
    %292 = arith.mulf %291, %287 : vector<8x64xf32>
    %293 = arith.mulf %292, %287 : vector<8x64xf32>
    %294 = arith.addf %287, %293 : vector<8x64xf32>
    %cst_125 = arith.constant 0.797884583 : f32
    %295 = vector.broadcast %cst_125 : f32 to vector<8x64xf32>
    %296 = arith.mulf %295, %294 : vector<8x64xf32>
    %297 = math.tanh %296 : vector<8x64xf32>
    %cst_126 = arith.constant 1.000000e+00 : f32
    %298 = vector.broadcast %cst_126 : f32 to vector<8x64xf32>
    %299 = arith.addf %298, %297 : vector<8x64xf32>
    %300 = arith.mulf %289, %299 : vector<8x64xf32>
    %301 = arith.truncf %300 : vector<8x64xf32> to vector<8x64xbf16>
    %c0_127 = arith.constant 0 : index
    %c0_128 = arith.constant 0 : index
    %c0_129 = arith.constant 0 : index
    %302 = vector.load %arg9[%c0_127, %c0_128, %c0_129] : memref<1x64x32xbf16, #tpu.memory_space<vmem>>, vector<1x64x32xbf16>
    %303 = vector.shape_cast %302 : vector<1x64x32xbf16> to vector<64x32xbf16>
    %cst_130 = arith.constant dense<0.000000e+00> : vector<8x32xf32>
    %304 = tpu.matmul %301, %303, %cst_130 {dimension_numbers = #tpu.dot_dimension_numbers<[1], [0], [0], [1], [0, 0, 1, 1], [], []>} : vector<8x64xbf16>, vector<64x32xbf16>, vector<8x32xf32> -> vector<8x32xf32>
    %305 = vector.broadcast %12 : vector<1x32xf32> to vector<8x32xf32>
    %306 = arith.addf %304, %305 : vector<8x32xf32>
    %307 = arith.addf %281, %306 : vector<8x32xf32>
    %cst_131 = arith.constant dense<0.000000e+00> : vector<8xf32>
    %308 = vector.multi_reduction <add>, %307, %cst_131 [1] : vector<8x32xf32> to vector<8xf32>
    %309 = vector.shape_cast %308 : vector<8xf32> to vector<8x1xf32>
    %cst_132 = arith.constant 3.200000e+01 : f32
    %310 = vector.broadcast %cst_132 : f32 to vector<8x1xf32>
    %311 = arith.divf %309, %310 : vector<8x1xf32>
    %312 = vector.broadcast %311 : vector<8x1xf32> to vector<8x32xf32>
    %313 = arith.subf %307, %312 : vector<8x32xf32>
    %314 = arith.mulf %313, %313 : vector<8x32xf32>
    %cst_133 = arith.constant dense<0.000000e+00> : vector<8xf32>
    %315 = vector.multi_reduction <add>, %314, %cst_133 [1] : vector<8x32xf32> to vector<8xf32>
    %316 = vector.shape_cast %315 : vector<8xf32> to vector<8x1xf32>
    %cst_134 = arith.constant 3.200000e+01 : f32
    %317 = vector.broadcast %cst_134 : f32 to vector<8x1xf32>
    %318 = arith.divf %316, %317 : vector<8x1xf32>
    %319 = vector.broadcast %311 : vector<8x1xf32> to vector<8x32xf32>
    %320 = arith.subf %307, %319 : vector<8x32xf32>
    %cst_135 = arith.constant 9.99999974E-6 : f32
    %321 = vector.broadcast %cst_135 : f32 to vector<8x1xf32>
    %322 = arith.addf %318, %321 : vector<8x1xf32>
    %323 = math.rsqrt %322 : vector<8x1xf32>
    %324 = vector.broadcast %323 : vector<8x1xf32> to vector<8x32xf32>
    %325 = arith.mulf %320, %324 : vector<8x32xf32>
    %326 = vector.broadcast %13 : vector<1x32xf32> to vector<8x32xf32>
    %327 = arith.mulf %325, %326 : vector<8x32xf32>
    %328 = vector.broadcast %14 : vector<1x32xf32> to vector<8x32xf32>
    %329 = arith.addf %327, %328 : vector<8x32xf32>
    %c1_i32_136 = arith.constant 1 : i32
    %330 = arith.cmpi slt, %arg1, %c1_i32_136 : i32
    %331 = arith.extui %330 : i1 to i32
    %c0_i32_137 = arith.constant 0 : i32
    %332 = arith.cmpi ne, %331, %c0_i32_137 : i32
    scf.if %332 {
      %c1_140 = arith.constant 1 : index
      %335 = arith.index_cast %227 : i32 to index
      %c0_141 = arith.constant 0 : index
      %336 = vector.load %arg16[%c1_140, %335, %c0_141] : memref<2x8x32xf32, #tpu.memory_space<vmem>>, vector<1x8x32xf32>
      %337 = vector.shape_cast %336 : vector<1x8x32xf32> to vector<8x32xf32>
      %338 = vector.shape_cast %329 : vector<8x32xf32> to vector<1x8x32xf32>
      tpu.vector_store %arg16[%c1_140, %335, %c0_141], %338 {strides = array<i32>} : memref<2x8x32xf32, #tpu.memory_space<vmem>>, vector<1x8x32xf32>,
    } else {
    }
    %333 = arith.extui %3 : i1 to i32
    %c0_i32_138 = arith.constant 0 : i32
    %334 = arith.cmpi ne, %333, %c0_i32_138 : i32
    scf.if %334 {
      %cst_140 = arith.constant dense<0.000000e+00> : vector<8xf32>
      %335 = vector.multi_reduction <add>, %329, %cst_140 [1] : vector<8x32xf32> to vector<8xf32>
      %336 = vector.shape_cast %335 : vector<8xf32> to vector<8x1xf32>
      %cst_141 = arith.constant 3.200000e+01 : f32
      %337 = vector.broadcast %cst_141 : f32 to vector<8x1xf32>
      %338 = arith.divf %336, %337 : vector<8x1xf32>
      %339 = vector.broadcast %338 : vector<8x1xf32> to vector<8x32xf32>
      %340 = arith.subf %329, %339 : vector<8x32xf32>
      %341 = arith.mulf %340, %340 : vector<8x32xf32>
      %cst_142 = arith.constant dense<0.000000e+00> : vector<8xf32>
      %342 = vector.multi_reduction <add>, %341, %cst_142 [1] : vector<8x32xf32> to vector<8xf32>
      %343 = vector.shape_cast %342 : vector<8xf32> to vector<8x1xf32>
      %cst_143 = arith.constant 3.200000e+01 : f32
      %344 = vector.broadcast %cst_143 : f32 to vector<8x1xf32>
      %345 = arith.divf %343, %344 : vector<8x1xf32>
      %346 = vector.broadcast %338 : vector<8x1xf32> to vector<8x32xf32>
      %347 = arith.subf %329, %346 : vector<8x32xf32>
      %cst_144 = arith.constant 9.99999974E-6 : f32
      %348 = vector.broadcast %cst_144 : f32 to vector<8x1xf32>
      %349 = arith.addf %345, %348 : vector<8x1xf32>
      %350 = math.rsqrt %349 : vector<8x1xf32>
      %351 = vector.broadcast %350 : vector<8x1xf32> to vector<8x32xf32>
      %352 = arith.mulf %347, %351 : vector<8x32xf32>
      %353 = vector.broadcast %17 : vector<1x32xf32> to vector<8x32xf32>
      %354 = arith.mulf %352, %353 : vector<8x32xf32>
      %355 = vector.broadcast %18 : vector<1x32xf32> to vector<8x32xf32>
      %356 = arith.addf %354, %355 : vector<8x32xf32>
      %c1_145 = arith.constant 1 : index
      %357 = arith.index_cast %227 : i32 to index
      %c0_146 = arith.constant 0 : index
      %358 = vector.load %arg15[%c1_145, %357, %c0_146] : memref<2x8x32xf32, #tpu.memory_space<vmem>>, vector<1x8x32xf32>
      %359 = vector.shape_cast %358 : vector<1x8x32xf32> to vector<8x32xf32>
      %360 = vector.shape_cast %356 : vector<8x32xf32> to vector<1x8x32xf32>
      tpu.vector_store %arg15[%c1_145, %357, %c0_146], %360 {strides = array<i32>} : memref<2x8x32xf32, #tpu.memory_space<vmem>>, vector<1x8x32xf32>,
    } else {
    }
    %c1_i32_139 = arith.constant 1 : i32
    return
  }
  func.func @transform_0(%arg0: i32, %arg1: i32, %arg2: memref<2xi32, #tpu.memory_space<smem>>) -> (i32, i32, i32) {
    %c0_i32 = arith.constant 0 : i32
    %c0_i32_0 = arith.constant 0 : i32
    %c0_i32_1 = arith.constant 0 : i32
    return %arg0, %c0_i32, %c0_i32_0 : i32, i32, i32
  }
  func.func @transform_1(%arg0: i32, %arg1: i32, %arg2: memref<2xi32, #tpu.memory_space<smem>>) -> (i32, i32, i32) {
    %c0_i32 = arith.constant 0 : i32
    %c0_i32_0 = arith.constant 0 : i32
    %c0_i32_1 = arith.constant 0 : i32
    return %arg1, %c0_i32, %c0_i32_0 : i32, i32, i32
  }
  func.func @transform_2(%arg0: i32, %arg1: i32, %arg2: memref<2xi32, #tpu.memory_space<smem>>) -> (i32, i32, i32) {
    %c0_i32 = arith.constant 0 : i32
    %c0_i32_0 = arith.constant 0 : i32
    %c0_i32_1 = arith.constant 0 : i32
    return %arg1, %c0_i32, %c0_i32_0 : i32, i32, i32
  }
  func.func @transform_3(%arg0: i32, %arg1: i32, %arg2: memref<2xi32, #tpu.memory_space<smem>>) -> (i32, i32, i32) {
    %c0_i32 = arith.constant 0 : i32
    %c0_i32_0 = arith.constant 0 : i32
    %c0_i32_1 = arith.constant 0 : i32
    return %arg1, %c0_i32, %c0_i32_0 : i32, i32, i32
  }
  func.func @transform_4(%arg0: i32, %arg1: i32, %arg2: memref<2xi32, #tpu.memory_space<smem>>) -> (i32, i32, i32) {
    %c0_i32 = arith.constant 0 : i32
    %c0_i32_0 = arith.constant 0 : i32
    %c0_i32_1 = arith.constant 0 : i32
    return %arg1, %c0_i32, %c0_i32_0 : i32, i32, i32
  }
  func.func @transform_5(%arg0: i32, %arg1: i32, %arg2: memref<2xi32, #tpu.memory_space<smem>>) -> (i32, i32, i32) {
    %c0_i32 = arith.constant 0 : i32
    %c0_i32_0 = arith.constant 0 : i32
    %c0_i32_1 = arith.constant 0 : i32
    return %arg1, %c0_i32, %c0_i32_0 : i32, i32, i32
  }
  func.func @transform_6(%arg0: i32, %arg1: i32, %arg2: memref<2xi32, #tpu.memory_space<smem>>) -> (i32, i32, i32) {
    %c0_i32 = arith.constant 0 : i32
    %c0_i32_0 = arith.constant 0 : i32
    %c0_i32_1 = arith.constant 0 : i32
    return %arg1, %c0_i32, %c0_i32_0 : i32, i32, i32
  }
  func.func @transform_7(%arg0: i32, %arg1: i32, %arg2: memref<2xi32, #tpu.memory_space<smem>>) -> (i32, i32, i32) {
    %c0_i32 = arith.constant 0 : i32
    %c0_i32_0 = arith.constant 0 : i32
    %c0_i32_1 = arith.constant 0 : i32
    return %arg1, %c0_i32, %c0_i32_0 : i32, i32, i32
  }
  func.func @transform_8(%arg0: i32, %arg1: i32, %arg2: memref<2xi32, #tpu.memory_space<smem>>) -> (i32, i32, i32) {
    %c0_i32 = arith.constant 0 : i32
    %c0_i32_0 = arith.constant 0 : i32
    %c0_i32_1 = arith.constant 0 : i32
    return %arg1, %c0_i32, %c0_i32_0 : i32, i32, i32
  }
  func.func @transform_9(%arg0: i32, %arg1: i32, %arg2: memref<2xi32, #tpu.memory_space<smem>>) -> (i32, i32) {
    %c0_i32 = arith.constant 0 : i32
    %c0_i32_0 = arith.constant 0 : i32
    %c0_i32_1 = arith.constant 0 : i32
    return %c0_i32, %c0_i32_0 : i32, i32
  }
  func.func @transform_10(%arg0: i32, %arg1: i32, %arg2: memref<2xi32, #tpu.memory_space<smem>>) -> (i32, i32) {
    %c0_i32 = arith.constant 0 : i32
    %c0_i32_0 = arith.constant 0 : i32
    %c0_i32_1 = arith.constant 0 : i32
    return %c0_i32, %c0_i32_0 : i32, i32
  }
  func.func @transform_11(%arg0: i32, %arg1: i32, %arg2: memref<2xi32, #tpu.memory_space<smem>>) -> (i32, i32) {
    %c0_i32 = arith.constant 0 : i32
    %c0_i32_0 = arith.constant 0 : i32
    %c0_i32_1 = arith.constant 0 : i32
    return %c0_i32, %c0_i32_0 : i32, i32
  }
  func.func @transform_12(%arg0: i32, %arg1: i32, %arg2: memref<2xi32, #tpu.memory_space<smem>>) -> (i32, i32, i32) {
    %c0_i32 = arith.constant 0 : i32
    %c0_i32_0 = arith.constant 0 : i32
    %c0_i32_1 = arith.constant 0 : i32
    return %arg0, %c0_i32, %c0_i32_0 : i32, i32, i32
  }
}

</mosaic_0001>

<bundles_post_ra>
// kernel: tpu_custom_call.1
= control target key start
LH: loop header
LB: loop body
LE: loop exit
PB: predicated region body
PF: predicated region fallthrough
CT: control target
= control target key end

     0   :  { %s3413_s0 = inlined_call_operand.vmem [shape: s32[2], index: 0, kind: input, shape index: {}]   ;;  %s3414_s1 = inlined_call_operand.hbm [shape: f32[2,8,32], index: 1, kind: input, shape index: {}]   ;;  %s3415_s2 = inlined_call_operand.vmem [shape: bf16[2,32,32], index: 2, kind: input, shape index: {}]   ;;  %s3416_s3 = inlined_call_operand.vmem [shape: bf16[2,32,32], index: 3, kind: input, shape index: {}]   ;;  %s3417_s4 = inlined_call_operand.vmem [shape: bf16[2,32,32], index: 4, kind: input, shape index: {}]   ;;  %s3418_s5 = inlined_call_operand.vmem [shape: bf16[2,32,32], index: 5, kind: input, shape index: {}]   ;;  %s3419_s6 = inlined_call_operand.hbm [shape: bf16[2,32,64], index: 6, kind: input, shape index: {}]   ;;  %s3420_s7 = inlined_call_operand.vmem [shape: bf16[2,64,32], index: 7, kind: input, shape index: {}]   ;;  %s3421_s8 = inlined_call_operand.vmem [shape: f32[2,9,32], index: 8, kind: input, shape index: {}]   ;;  %s3422_s9 = inlined_call_operand.vmem [shape: f32[2,1,64], index: 9, kind: input, shape index: {}]   ;;  %s3423_s10 = inlined_call_operand.hbm [shape: f32[32,32], index: 10, kind: input, shape index: {}]   ;;  %s3424_s11 = inlined_call_operand.vmem [shape: f32[1,32], index: 11, kind: input, shape index: {}]   ;;  %s3425_s12 = inlined_call_operand.vmem [shape: f32[1,32], index: 12, kind: input, shape index: {}]   ;;  %s3426_s13 = inlined_call_operand.hbm [shape: f32[2,8,32], index: 13, kind: output, shape index: {}]  }
   0x1   :  { %3433 = sst [smem:[#allocation18_spill]] %s3414_s1  ;;  %s18_s27 = sshll.u32 %s3413_s0, 4  ;;  %s19_s27 = int_to_ptr.vmem [resolvable:$true] %s18_s27 }
   0x2   :  { %3434 = sst [smem:[#allocation19_spill]] %s3415_s2  ;;  %s2609_s28 = scalar_lea.vmem %s19_s27, 16 }
   0x3   :  { %3435 = sst [smem:[#allocation20_spill]] %s3416_s3  ;;  %p2610_p0 = scmp.ne.s32.totalorder %s19_s27, %s2609_s28 }
   0x4   :  { %3436 = sst [smem:[#allocation21_spill]] %s3419_s6  ;;  %p2614_p1 = scmp.lt.s32.totalorder %s19_s27, %s19_s27 }
   0x5   :  { %3437 = sst [smem:[#allocation22_spill]] %s3420_s7  ;;  %p2615_p2 = scmp.lt.s32.totalorder %s2609_s28, %s2609_s28 }
   0x6   :  { %3438 = sst [smem:[#allocation23_spill]] %s3421_s8 }
   0x7   :  { %3439 = sst [smem:[#allocation24_spill]] %s3422_s9  ;;  %p2616_p3 = por %p2615_p2, %p2614_p1 }
   0x8   :  { %3440 = sst [smem:[#allocation25_spill]] %s3423_s10 }
   0x9   :  { %3441 = sst [smem:[#allocation26_spill]] %s3424_s11  ;;  %p2617_p4 = pnand %p2616_p3, %p2610_p0 }
   0xa   :  { %3442 = sst [smem:[#allocation27_spill]] %s3425_s12 }
   0xb   :  { %3443 = sst [smem:[#allocation28_spill]] %s3426_s13 }
   0xc   :  { %2620 = shalt.err (!%p2617_p4)  }
   0xd   :  { %s2799_s29 = smov [#allocation4]  }
   0xe   :  { %21 = dma.vmem_to_smem %s19_s27, 16, %s2799_s29, [#allocation3] }
   0xf   :  { %2757 = dma.done.wait [#allocation3], 16 }
  0x10   :  { %2758 = vsyncadd [#allocation3], 4294967280 }
  0x11   :  { %23 = sfence }
  0x12   :  { %24 = vsyncpa [#allocation6], 0 }
  0x13   :  { %25 = vsyncpa [#allocation9], 0 }
  0x14   :  { %27 = vsyncpa [#allocation9 + $0x1], 0 }
  0x15   :  { %28 = vsyncpa [#allocation7], 0  ;;  %s2885_s30 = smov 0   ;;  %s2887_s0 = smov 0  }
  0x16   :  { %s2889_s14 = smov 0   ;;  %s2891_s15 = smov 0  }
  0x17   :  { %s2893_s16 = smov 0   ;;  %s2895_s17 = smov 0  }
  0x18 LB: > { %s2914_s18 = sadd.s32 4294967295, %s2797_s17   ;;  %p190_p5 = scmp.ne.s32.totalorder %s2785_s14, %s2781_s0  ;;  %s2797_s17 = sphi %s2895_s17, %s34_s17   ;;  %s2793_s16 = sphi %s2893_s16, %s3474_s16   ;;  %s2789_s15 = sphi %s2891_s15, %s3473_s15   ;;  %s2785_s14 = sphi %s2889_s14, %s3472_s14   ;;  %s2781_s0 = sphi %s2887_s0, %s3471_s0   ;;  %s2777_s30 = sphi %s2885_s30, %s3470_s30  }
  0x19   : > { %p191_p6 = scmp.eq.s32.totalorder %s2797_s17, 0  ;;  %p196_p7 = scmp.ne.s32.totalorder %s2781_s0, %s2777_s30 }
  0x1a   : > { %p3428_p8 = scmp.eq.s32.totalorder %s2914_s18, 0  ;;  %p2160_p9 = scmp.ge.s32.totalorder %s2797_s17, 1 }
  0x1b   : > { %p192_p10 = por %p191_p6, %p190_p5  ;;  %p374_p11 = scmp.lt.s32.totalorder %s2797_s17, 3 }
  0x1c   : > { %p2925_p12 = por %p3428_p8, %p196_p7  ;;  %s2800_s21 = smov [#allocation10]  }
  0x1d   : > { %p2929_p13 = pnand %p2160_p9, %p374_p11  ;;  %s402_s22 = sshll.u32 %s2800_s21, 4  ;;  %s403_s22 = int_to_ptr.vmem [resolvable:$true] %s402_s22 }
  0x1e   : > { %s3444_s19 = scalar_select %p2925_p12, 1, 0 }
  0x1f   : > { %s3445_s20 = scalar_select %p2929_p13, 1, 0 }
  0x20   : > { %p2474_p0 = pneg %p2929_p13  ;;  %p2487_p2 = scmp.lt.s32.totalorder %s2797_s17, 2 }
  0x21   : > { %s3448_s10 = sld [smem:[#allocation25_spill]] }
  0x22   : > { %p2937_p1 = pnand %p2474_p0, %p3428_p8  ;;  %p2942_p3 = pnand %p2487_p2, %p192_p10 }
  0x24   : > { %s3447_s24 = scalar_select %p2942_p3, 1, 0 }
  0x25   : > { %p2623_p5 = pneg %p2937_p1 }
  0x27   : > { %s2621_s27 = scalar_lea.hbm %s3448_s10, 512 }
  0x28   : > { %p2622_p4 = scmp.ne.s32.totalorder %s3448_s10, %s2621_s27  ;;  %p2628_p9 = scmp.lt.u32.totalorder %s2621_s27, %s3448_s10 }
  0x2a   : > { %p2624_p6 = pnand %p2623_p5, %p2622_p4 }
  0x2c   : > { %p2625_p7 = pneg %p2624_p6 }
  0x2e   : > { %p2630_p10 = pnand %p2628_p9, %p2625_p7 }
  0x30   : > { %2633 = shalt.err (!%p2630_p10)
}
  0x31   : > { %s2634_s13 = scalar_lea.vmem %s403_s22, 512  ;;  %p2642_p8 = scmp.lt.s32.totalorder %s403_s22, %s403_s22 }
  0x32   : > { %p2635_p11 = scmp.ne.s32.totalorder %s403_s22, %s2634_s13  ;;  %p2643_p12 = scmp.lt.s32.totalorder %s2634_s13, %s2634_s13 }
  0x34   : > { %p2637_p0 = pnand %p2635_p11, %p2623_p5  ;;  %p2644_p13 = por %p2643_p12, %p2642_p8 }
  0x36   : > { %p2638_p2 = pneg %p2637_p0 }
  0x38   : > { %p2645_p3 = pnand %p2644_p13, %p2638_p2 }
  0x3a   : > { %2648 = shalt.err (!%p2645_p3)
}
  0x3b   : > { %s2801_s25 = smov 128   ;;  %s2802_s26 = smov 8  }
  0x3c   : > { %2480 = dma.hbm_to_vmem [thread:$0]  (!%p2937_p1), %s3448_s10, 512, %s403_s22, [#allocation9], %s2801_s25, %s2801_s25, %s2802_s26  }
  0x3d   : > { %s2803_s29 = smov [#allocation5]   ;;  %s3449_s1 = sld [smem:[#allocation18_spill]] }
  0x3e   : > { %s389_s30 = sshll.u32 %s2803_s29, 4  ;;  %s390_s30 = int_to_ptr.vmem [resolvable:$true] %s389_s30 }
  0x43   : > { %s2649_s11 = scalar_lea.hbm %s3449_s1, 256 }
  0x44   : > { %p2650_p8 = scmp.ne.s32.totalorder %s3449_s1, %s2649_s11  ;;  %p2656_p3 = scmp.lt.u32.totalorder %s2649_s11, %s3449_s1 }
  0x46   : > { %p2652_p12 = pnand %p2650_p8, %p2623_p5 }
  0x48   : > { %p2653_p13 = pneg %p2652_p12 }
  0x4a   : > { %p2658_p4 = pnand %p2656_p3, %p2653_p13 }
  0x4c   : > { %2661 = shalt.err (!%p2658_p4)
}
  0x4d   : > { %s2662_s22 = scalar_lea.vmem %s390_s30, 256  ;;  %p2670_p10 = scmp.lt.s32.totalorder %s390_s30, %s390_s30 }
  0x4e   : > { %p2663_p6 = scmp.ne.s32.totalorder %s390_s30, %s2662_s22  ;;  %p2671_p11 = scmp.lt.s32.totalorder %s2662_s22, %s2662_s22 }
  0x50   : > { %p2665_p7 = pnand %p2663_p6, %p2623_p5  ;;  %p2672_p0 = por %p2671_p11, %p2670_p10 }
  0x52   : > { %p2666_p9 = pneg %p2665_p7 }
  0x54   : > { %p2673_p2 = pnand %p2672_p0, %p2666_p9 }
  0x56   : > { %2676 = shalt.err (!%p2673_p2)
}
  0x57   : > { %2477 = dma.hbm_to_vmem [thread:$0]  (!%p2937_p1), %s3449_s1, 256, %s390_s30, [#allocation6], %s2801_s25, %s2801_s25, %s2802_s26  }
  0x58   : > { %s43_s7 = sadd.s32 1, %s2793_s16  ;;  %s183_s8 = sadd.s32 1, %s2785_s14 }
  0x59   : > { %p44_p5 = scmp.ge.s32.totalorder %s43_s7, 2  ;;  %s454_s11 = sand.u32 1, %s2797_s17  }
  0x5a   : > { %s456_s27 = sand.u32 1, %s2785_s14   ;;  %s2245_s28 = sshll.u32 %s2793_s16, 8 }
  0x5b   : > { %s3476_s7 = smov (%p44_p5, %s43_s7), 0  ;;  %s2164_s23 = sshll.u32 %s456_s27, 4 }
  0x5c   : > { %3450 = sst [smem:[#allocation17_spill]] %s3476_s7  ;;  %s180_s29 = ssub.s32 %s2793_s16, %s3476_s7 }
  0x5d   : > { %p181_p8 = scmp.eq.s32.totalorder %s180_s29, 0  ;;  %s3451_s6 = sld [smem:[#allocation21_spill]] }
  0x5e   : > { %s458_s25 = scalar_lea.vmem [#allocation8], %s2164_s23  ;;  %s3007_s9 = scalar_lea.sflag [#allocation9], %s454_s11 }
  0x5f   : > { %s465_s26 = sshll.u32 %s458_s25, 4  ;;  %p3452_p12 = scmp.ne.s32.totalorder %s3447_s24, 0  ;;  %s3005_s26 = int_to_ptr.vmem [resolvable:$true] %s465_s26 }
  0x60   : > { %s3003_s30 = scalar_select %p181_p8, %s2785_s14, %s183_s8  }
  0x61   : > { %p2679_p13 = pneg %p3452_p12 }
  0x63   : > { %s3000_s22 = scalar_lea.hbm %s3451_s6, %s2245_s28  ;;  %s2682_s29 = scalar_lea.hbm %s3451_s6, 512 }
  0x64   : > { %s2677_s12 = scalar_lea.hbm %s3000_s22, 256  ;;  %p2683_p6 = scmp.lt.u32.totalorder %s3000_s22, %s3451_s6 }
  0x65   : > { %p2678_p1 = scmp.ne.s32.totalorder %s3000_s22, %s2677_s12  ;;  %p2684_p7 = scmp.lt.u32.totalorder %s2682_s29, %s2677_s12 }
  0x66   : > { %p2686_p10 = scmp.lt.u32.totalorder %s2677_s12, %s3000_s22 }
  0x67   : > { %p2680_p3 = pnand %p2679_p13, %p2678_p1  ;;  %p2685_p9 = por %p2684_p7, %p2683_p6 }
  0x69   : > { %p2681_p4 = pneg %p2680_p3  ;;  %p2687_p11 = por %p2686_p10, %p2685_p9 }
  0x6b   : > { %p2688_p0 = pnand %p2687_p11, %p2681_p4 }
  0x6d   : > { %2691 = shalt.err (!%p2688_p0)
}
  0x6e   : > { %s2692_s8 = scalar_lea.vmem %s3005_s26, 256  ;;  %s2804_s11 = smov [#allocation8]  }
  0x6f   : > { %p2693_p2 = scmp.ne.s32.totalorder %s3005_s26, %s2692_s8  ;;  %s2697_s13 = sshll.u32 %s2804_s11, 4  ;;  %s2698_s13 = int_to_ptr.vmem [resolvable:$false] %s2697_s13 }
  0x70   : > { %s2699_s25 = scalar_lea.vmem %s2698_s13, 512  ;;  %p2700_p1 = scmp.lt.s32.totalorder %s3005_s26, %s2698_s13 }
  0x71   : > { %p2695_p5 = pnand %p2693_p2, %p2679_p13  ;;  %p2701_p3 = scmp.lt.s32.totalorder %s2699_s25, %s2692_s8 }
  0x73   : > { %p2696_p8 = pneg %p2695_p5  ;;  %p2702_p6 = por %p2701_p3, %p2700_p1 }
  0x75   : > { %p2703_p7 = pnand %p2702_p6, %p2696_p8 }
  0x77   : > { %2706 = shalt.err (!%p2703_p7)
}
  0x78   : > { %s2805_s12 = smov 64   ;;  %s2806_s27 = smov 4  }
  0x79   : > { %2484 = dma.hbm_to_vmem [thread:$0]  (!%p3452_p12), %s3000_s22, 256, %s3005_s26, %s3007_s9, %s2805_s12, %s2805_s12, %s2806_s27  }
  0x7a   : > { %p3453_p13 = scmp.ne.s32.totalorder %s3445_s20, 0 }
  0x7b   : > { %p3454_p4 = scmp.eq.s32.totalorder (!%p3453_p13), %s2914_s18, 0 }
  0x7c   : > { %499 = sbr.rel (%p3453_p13) target bundleno = 4999 (0x1387), region = 68 }
  0x83   : > { %2760 = dma.done.wait (%p3454_p4), [#allocation6], 256   ;;  %p3455_p9 = pmov %p3454_p4 }
  0x84   : > { %s505_s28 = sand.u32 1, %s2914_s18   ;;  %s507_s29 = sand.u32 1, %s2781_s0  }
  0x85   : > { %2762 = vsyncadd (%p3455_p9), [#allocation6], 4294967040  ;;  %s2169_s23 = sshll.u32 %s507_s29, 4  ;;  %s506_s21 = scalar_lea.sflag [#allocation9], %s505_s28 }
  0x86   : > { %s3043_s8 = scalar_lea.vmem [#allocation8], %s2169_s23  ;;  %p3456_p10 = scmp.ne.s32.totalorder %s3444_s19, 0 }
  0x88   : > { %2764 = dma.done.wait (%p3456_p10), %s506_s21, 256  }
  0x89   : > { %2766 = vsyncadd (%p3456_p10), %s506_s21, 4294967040  ;;  %p3457_p12 = pmov %p3454_p4 }
  0x8a   : > { %p3458_p11 = pmov %p3454_p4 }
  0x8b   : > { %2768 = dma.done.wait (%p3457_p12), [#allocation9], 512  }
  0x8c   : > { %2770 = vsyncadd (%p3458_p11), [#allocation9], 4294966784  ;;  %p583_p0 = scmp.lt.s32.totalorder %s2789_s15, 1  ;;  %s3459_s2 = sld [smem:[#allocation19_spill]] }
  0x8d   : > { %s3460_s3 = sld [smem:[#allocation20_spill]]  ;;  %s3461_s26 = sld [smem:[#allocation22_spill]] }
  0x8e   : > { %s3055_s20 = scalar_select %p583_p0, %s2789_s15, 1 }
  0x8f   : > { %s3462_s11 = sld [smem:[#allocation23_spill]]  ;;  %s3463_s12 = sld [smem:[#allocation24_spill]] }
  0x90   : > { %s2246_s24 = sshll.u32 %s3055_s20, 4  ;;  %s2250_s22 = sshll.u32 %s3055_s20, 5 }
  0x91   : > { %s3072_s28 = scalar_lea.vmem %s3417_s4, %s2246_s24  ;;  %s3077_s21 = scalar_lea.vmem %s3418_s5, %s2246_s24 }
  0x92   : > { %s3062_s19 = scalar_lea.vmem %s3459_s2, %s2246_s24  ;;  %p2183_p2 = scmp.ne.s32.totalorder %s2789_s15, 0 }
  0x93   : > { %s3067_s25 = scalar_lea.vmem %s3460_s3, %s2246_s24  ;;  %s3082_s9 = scalar_lea.vmem %s3461_s26, %s2250_s22  ;;  %v622_v0 = vld [vmem:[#allocation5] sm:$0xff] (!%p2183_p2)  ;;  %vm624_vm0 = vcmask (!%p2183_p2), 261120   ;;  %v623_v1 = vld [vmem:[#allocation5 + $0x8] sm:$0xff] (!%p2183_p2) }
  0x94   : > { %621 = sbr.rel (%p2183_p2) target bundleno = 155 (0x9b), region = 84  ;;  %625 = vst.msk [vmem:[#allocation2] sm:$0xff] (!%p2183_p2), %vm624_vm0, %v622_v0  ;;  %626 = vst.msk [vmem:[#allocation2 + $0x8] sm:$0xff] (!%p2183_p2), %vm624_vm0, %v623_v1 }
  0x95   : > { %s3087_s13 = scalar_lea.vmem %s3462_s11, %s2246_s24  ;;  %s615_s27 = scalar_lea.vmem %s3463_s12, %s3055_s20 }
  0x9b PF: > { %s3464_s22 = sld [smem:[#allocation26_spill]]  ;;  %s3465_s10 = sld [smem:[#allocation27_spill]]  ;;  %v2553_v4 = vld [vmem:[%s3067_s25] sm:$0xff]   ;;  %v2807_v5 = vmov 0.0   ;;  %v2554_v6 = vld [vmem:[%s3067_s25 + $0x8] sm:$0xff]   ;;  %vm2808_vm1 = vmmov 0   ;;  %v647_v19 = vlaneseq }
  0x9c   : > { %2310 = vmatprep.subr.bf16.mxu1 %v2807_v5  ;;  %v3107_v7 = vld [vmem:[#allocation2] sm:$0xff]  ;;  %2314 = vmatprep.mubr.msk.bf16.mxu1 %vm2808_vm1, %v2807_v5  ;;  %vm663_vm2 = vcmask 261120   ;;  %v2556_v10 = vld [vmem:[%s3072_s28 + $0x8] sm:$0xff]   ;;  %v3142_v16 = vld [vmem:[#allocation10 + $0x10] sm:$0xff]  ;;  %s640_s7 = sld [smem:[#allocation4]]  ;;  %vm806_vm3 = vcmask 1043456  }
  0x9d   : > { %2311 = vmatpush3.bf16.msra.mxu1 %v2553_v4  ;;  %v642_v8 = vpack.c.bf16 %v3107_v7, %v3107_v7  ;;  %v2555_v9 = vld [vmem:[%s3072_s28] sm:$0xff]   ;;  %v2558_v12 = vld [vmem:[%s3062_s19 + $0x8] sm:$0xff]   ;;  %v3144_v17 = vld [vmem:[#allocation10 + $0x18] sm:$0xff]  ;;  %v3152_v20 = vshrl.u32 %v647_v19, 7  ;;  %vm799_vm7 = vcmask 64512   ;;  %vm1230_vm8 = vcmask 523264  }
  0x9e   : > { %2312 = vmatprep.subr.bf16.mxu1 %v2807_v5  ;;  %v2557_v11 = vld [vmem:[%s3062_s19] sm:$0xff]   ;;  %v3134_v14 = vld [vmem:[#allocation10 + $0x8] sm:$0xff]  ;;  %v3148_v18 = vpack.c.bf16 %v3144_v17, %v3142_v16  ;;  %p2211_p5 = scmp.ge.s32.totalorder %s2789_s15, 1 }
  0x9f   : > { %v3132_v13 = vld [vmem:[#allocation10] sm:$0xff]  ;;  %v649_v21 = vsub.s32 1, %v3152_v20  ;;  %v713_v27 = vsub.s32 2, %v3152_v20  ;;  %v3168_v36 = vsub.s32 0, %v3152_v20 }
  0xa0   : > { %v3138_v15 = vpack.c.bf16 %v3134_v14, %v3132_v13  ;;  %v3156_v22 = vld [vmem:[%s3087_s13] sm:$0xff] }
  0xa1   : > { %v3097_v2 = vld [vmem:[%s3464_s22] sm:$0x1]  ;;  %2313 = vmatpush3.bf16.msra.mxu1 %v2554_v6  ;;  %v3159_v23 = vrot.slane %v3156_v22, %v649_v21  ;;  %v3164_v31 = vrot.slane %v3156_v22, %v713_v27  ;;  %v3173_v40 = vrot.slane %v3156_v22, %v3168_v36 }
  0xa2   : > { %v3102_v3 = vld [vmem:[%s3465_s10] sm:$0x1]  ;;  %2318 = vmatprep.subr.bf16.mxu1 %v2807_v5  ;;  %v771_v33 = vstv %s640_s7 }
  0xa3   : > { %vm772_vm4 = vcmp.lt.s32.totalorder %v3152_v20, %v771_v33 }
  0xa4   : > { %2315 = vmatmul.mubr.msk.bf16.vlgmr.msra.gmra.mrb[0].mxu1 %vm663_vm2, %v642_v8  ;;  %v2190_v43 = vsel %vm772_vm4, 1.0, %v2807_v5 }
  0xa5   : > { %2319 = vmatpush3.bf16.msra.mxu1 %v2555_v9  ;;  %2322 = vmatprep.mubr.msk.bf16.mxu1 %vm2808_vm1, %v2807_v5 }
  0xa6   : > { %2320 = vmatprep.subr.bf16.mxu1 %v2807_v5 }
  0xa9   : > { %2321 = vmatpush3.bf16.msra.mxu1 %v2556_v10 }
  0xaa   : > { %2332 = vmatprep.subr.bf16.mxu1 %v2807_v5 }
  0xac   : > { %2323 = vmatmul.mubr.msk.bf16.vlgmr.msra.gmra.mrb[4].mxu1 %vm663_vm2, %v642_v8 }
  0xad   : > { %2333 = vmatpush3.bf16.msra.mxu1 %v2557_v11  ;;  %2336 = vmatprep.mubr.msk.bf16.mxu1 %vm2808_vm1, %v2807_v5 }
  0xae   : > { %2334 = vmatprep.subr.bf16.mxu1 %v2807_v5 }
  0xb1   : > { %2335 = vmatpush3.bf16.msra.mxu1 %v2558_v12 }
  0xb2   : > { %2348 = vmatprep.subr.bf16.mxu1 %v2807_v5 }
  0xb4   : > { %2337 = vmatmul.mubr.msk.bf16.vlgmr.msra.gmra.mrb[8].mxu1 %vm663_vm2, %v642_v8 }
  0xb5   : > { %2352 = vmatprep.mubr.msk.bf16.mxu1 %vm2808_vm1, %v2807_v5  ;;  %2349 = vmatpush3.bf16.msra.mxu1 %v3138_v15 }
  0xb6   : > { %2350 = vmatprep.subr.bf16.mxu1 %v2807_v5 }
  0xb9   : > { %2351 = vmatpush3.bf16.msra.mxu1 %v3148_v18 }
  0xba   : > { %2364 = vmatprep.subr.bf16.mxu1 %v2807_v5 }
 0x177   : > { %v701_v24 = vpop.f32.mrb[0].mxu1 }
 0x178   : > { %v702_v25 = vadd.f32 %v701_v24, %v3159_v23  ;;  %v2316_v26 = vpop.f32.mrb[1].mxu1 }
 0x179   : > { %v704_v28 = vpop.f32.mrb[2].mxu1 }
 0x17a   : > { %v777_v29 = vmul.f32 1.442695, %v702_v25  ;;  %v2317_v30 = vpop.f32.mrb[3].mxu1  ;;  %v776_v42 = vadd.f32 1.0, %v702_v25  ;;  %vm775_vm5 = vcmp.gt.f32.partialorder %v702_v25, 0.0 }
 0x17c   : > { %2567 = vpow2.f32 %v777_v29 }
 0x17f   : > { %v761_v32 = vpop.f32.mrb[4].mxu1 }
 0x180   : > { %v762_v34 = vadd.f32 %v761_v32, %v3164_v31  ;;  %v2324_v35 = vpop.f32.mrb[5].mxu1  ;;  %v2559_v32 = vld [vmem:[%s3077_s21] sm:$0xff]  }
 0x181   : > { %v764_v37 = vpop.f32.mrb[6].mxu1 }
 0x182   : > { %v782_v38 = vpack.c.bf16 %v762_v34, %v762_v34  ;;  %v2325_v39 = vpop.f32.mrb[7].mxu1  ;;  %v2560_v34 = vld [vmem:[%s3077_s21 + $0x8] sm:$0xff]  }
 0x184   : > { %2458 = vmatprep.subr.msk.bf16.mxu0 %vm806_vm3, %v782_v38  ;;  %v808_v41 = vsel %vm806_vm3, %v782_v38, 0 }
 0x185   : > { %2327 = vmatpush3.bf16.msra.mxu0 %v808_v41 }
 0x186   : > { %v2568_v44 = vpop.eup %2567  ;;  %2340 = vmatprep.subr.bf16.mxu0 %v2807_v5 }
 0x187   : > { %v927_v45 = vpop.f32.mrb[8].mxu1  ;;  %v779_v46 = vsel %vm775_vm5, %v776_v42, %v2568_v44 }
 0x188   : > { %v928_v47 = vadd.f32 %v927_v45, %v3173_v40  ;;  %v780_v48 = vmul.f32 %v2190_v43, %v779_v46  ;;  %v2338_v49 = vpop.f32.mrb[9].mxu1  ;;  %v1036_v45 = vsub.s32 3, %v3152_v20 }
 0x189   : > { %v930_v50 = vpop.f32.mrb[10].mxu1 }
 0x18a   : > { %v935_v51 = vmul.f32 1.442695, %v928_v47  ;;  %v781_v52 = vpack.c.bf16 %v780_v48, %v780_v48  ;;  %v2339_v53 = vpop.f32.mrb[11].mxu1  ;;  %v859_v54 = vsel %vm663_vm2, %v780_v48, 0.0  ;;  %v934_v59 = vadd.f32 1.0, %v928_v47 }
 0x18b   : > { %v860_v55 = vrot.slane %v859_v54, 4  ;;  %vm933_vm6 = vcmp.gt.f32.partialorder %v928_v47, 0.0  ;;  %v3206_v46 = vrot.slane %v3156_v22, %v1036_v45 }
 0x18c   : > { %2569 = vpow2.f32 %v935_v51  ;;  %783 = vxpose.xlu0.c.b16.start.end [1/1] (short) (narrow) %v781_v52, 32 }
 0x18d   : > { %v861_v56 = vadd.f32 %v860_v55, %v859_v54 }
 0x18f   : > { %v862_v57 = vrot.slane %v861_v56, 2 }
 0x191   : > { %v863_v58 = vadd.f32 %v862_v57, %v861_v56 }
 0x193   : > { %v864_v60 = vrot.slane %v863_v58, 1 }
 0x195   : > { %v865_v62 = vadd.f32 %v864_v60, %v863_v58  ;;  %v2562_v60 = vld [vmem:[%s3043_s8 + $0x8] sm:$0xff]  }
 0x196   : > { %v2570_v61 = vpop.eup %2569 }
 0x197   : > { %v937_v63 = vsel %vm933_vm6, %v934_v59, %v2570_v61  ;;  %v2561_v59 = vld [vmem:[%s3043_s8] sm:$0xff]  }
 0x198   : > { %v982_v0 = vmul.f32 %v937_v63, %v865_v62  ;;  %v938_v33 = vpack.c.bf16 %v937_v63, %v937_v63  ;;  %v1110_v63 = vsub.s32 4, %v3152_v20 }
 0x19a   : > { %v983_v1 = vpack.c.bf16 %v982_v0, %v982_v0  ;;  %v1115_v0 = vsub.s32 5, %v3152_v20 }
 0x19c   : > { %2353 = vmatmul.mubr.msk.bf16.vlgmr.msra.gmra.mrb[12].mxu1 %vm663_vm2, %v983_v1  ;;  %v3218_v1 = vrot.slane %v3156_v22, %v1110_v63 }
 0x19d   : > { %2368 = vmatprep.mubr.msk.bf16.mxu1 %vm2808_vm1, %v2807_v5  ;;  %2365 = vmatpush3.bf16.msra.mxu1 %v2561_v59 }
 0x19e   : > { %2366 = vmatprep.subr.bf16.mxu1 %v2807_v5 }
 0x1a1   : > { %2367 = vmatpush3.bf16.msra.mxu1 %v2562_v60 }
 0x1f2   : > { %v791_v4 = vpop.trf.xlu0 }
 0x1f3   : > { %2328 = vmatprep.mubr.msk.bf16.mxu0 %vm799_vm7, %v791_v4 }
 0x1f6   : > { %v792_v6 = vpop.trf.xlu0 }
 0x1f7   : > { %2329 = vmatmul.mubr.msk.bf16.vlgmr.msra.gmra.mrb[0].mxu0 %vm799_vm7, %v792_v6 }
 0x1f8   : > { %2344 = vmatprep.mubr.msk.bf16.mxu0 %vm2808_vm1, %v2807_v5 }
 0x26f   : > { %v1021_v8 = vpop.f32.mrb[12].mxu1 }
 0x270   : > { %v2354_v9 = vpop.f32.mrb[13].mxu1  ;;  %v1022_v35 = vadd.f32 1e-06, %v1021_v8  ;;  %v3221_v8 = vrot.slane %v3156_v22, %v1115_v0 }
 0x271   : > { %v1024_v10 = vpop.f32.mrb[14].mxu1 }
 0x272   : > { %v2355_v11 = vpop.f32.mrb[15].mxu1  ;;  %2571 = vrcp.f32 %v1022_v35 }
 0x27c   : > { %v2572_v37 = vpop.eup %2571 }
 0x2ca   : > { %v2330_v12 = vpop.f32.mrb[0].mxu0 }
 0x2cb   : > { %v844_v19 = vpop.f32.mrb[1].mxu0  ;;  %v869_v24 = vmul.f32 %v2330_v12, %v3142_v16  ;;  %v2563_v12 = vld [vmem:[%s3082_s9] sm:$0xff]  }
 0x2cc   : > { %v2331_v21 = vpop.f32.mrb[2].mxu0  ;;  %v867_v27 = vmul.f32 %v844_v19, %v3132_v13  ;;  %v2564_v19 = vld [vmem:[%s3082_s9 + $0x8] sm:$0xff]  }
 0x2cd   : > { %v870_v25 = vmul.f32 %v2331_v21, %v3144_v17  ;;  %v847_v26 = vpop.f32.mrb[3].mxu0  ;;  %v2565_v21 = vld [vmem:[%s3082_s9 + $0x10] sm:$0xff]  }
 0x2ce   : > { %v868_v28 = vmul.f32 %v847_v26, %v3134_v14 }
 0x2cf   : > { %v872_v29 = vpack.c.bf16 %v870_v25, %v869_v24  ;;  %v2566_v24 = vld [vmem:[%s3082_s9 + $0x18] sm:$0xff]   ;;  %v3238_v25 = vld [vmem:[%s615_s27] ss:$0 sm:$0xff] }
 0x2d0   : > { %v871_v30 = vpack.c.bf16 %v868_v28, %v867_v27 }
 0x2d2   : > { %2341 = vmatpush3.bf16.msra.mxu0 %v871_v30 }
 0x2d3   : > { %2342 = vmatprep.subr.bf16.mxu0 %v2807_v5 }
 0x2d6   : > { %2343 = vmatpush3.bf16.msra.mxu0 %v872_v29 }
 0x2d7   : > { %2356 = vmatprep.subr.bf16.mxu0 %v2807_v5 }
 0x2d9   : > { %2345 = vmatmul.mubr.msk.bf16.vlgmr.msra.gmra.mrb[4].mxu0 %vm663_vm2, %v938_v33 }
 0x2da   : > { %2357 = vmatpush3.bf16.msra.mxu0 %v2559_v32  ;;  %2360 = vmatprep.mubr.msk.bf16.mxu0 %vm2808_vm1, %v2807_v5 }
 0x2db   : > { %2358 = vmatprep.subr.bf16.mxu0 %v2807_v5 }
 0x2de   : > { %2359 = vmatpush3.bf16.msra.mxu0 %v2560_v34 }
 0x2df   : > { %2372 = vmatprep.subr.bf16.mxu0 %v2807_v5 }
 0x3ac   : > { %v976_v38 = vpop.f32.mrb[4].mxu0 }
 0x3ad   : > { %v1028_v39 = vmul.f32 %v2572_v37, %v976_v38  ;;  %v2346_v41 = vpop.f32.mrb[5].mxu0 }
 0x3ae   : > { %v979_v42 = vpop.f32.mrb[6].mxu0 }
 0x3af   : > { %v1029_v43 = vpack.c.bf16 %v1028_v39, %v1028_v39  ;;  %v2347_v44 = vpop.f32.mrb[7].mxu0 }
 0x3b0   : > { %v1204_v44 = vsub.s32 6, %v3152_v20 }
 0x3b1   : > { %2361 = vmatmul.mubr.msk.bf16.vlgmr.msra.gmra.mrb[8].mxu0 %vm663_vm2, %v1029_v43 }
 0x3b2   : > { %2380 = vmatprep.mubr.msk.bf16.mxu0 %vm2808_vm1, %v2807_v5  ;;  %2373 = vmatpush3.bf16.msra.mxu0 %v2563_v12  ;;  %v3244_v45 = vrot.slane %v3156_v22, %v1204_v44 }
 0x3b3   : > { %2374 = vmatprep.subr.bf16.mxu0 %v2807_v5 }
 0x3b6   : > { %2375 = vmatpush3.bf16.msra.mxu0 %v2564_v19 }
 0x3b7   : > { %2376 = vmatprep.subr.bf16.mxu0 %v2807_v5 }
 0x3ba   : > { %2377 = vmatpush3.bf16.msra.mxu0 %v2565_v21 }
 0x3bb   : > { %2378 = vmatprep.subr.bf16.mxu0 %v2807_v5 }
 0x3be   : > { %2379 = vmatpush3.bf16.msra.mxu0 %v2566_v24 }
 0x484   : > { %v1087_v47 = vpop.f32.mrb[8].mxu0 }
 0x485   : > { %v1088_v48 = vadd.f32 %v1087_v47, %v3206_v46  ;;  %v2362_v49 = vpop.f32.mrb[9].mxu0 }
 0x486   : > { %v1090_v50 = vpop.f32.mrb[10].mxu0 }
 0x487   : > { %v2363_v51 = vpop.f32.mrb[11].mxu0  ;;  %v1093_v52 = vadd.f32 %v1088_v48, %v3107_v7 }
 0x489   : > { %v1094_v53 = vsel %vm663_vm2, %v1093_v52, 0.0 }
 0x48a   : > { %1095 = vadd.xlane.f32.xlu0 %v1094_v53 }
 0x517   : > { %v1096_v54 = vpop.xlane.xlu0 %1095 }
 0x518   : > { %v1098_v55 = vmul.f32 0.03125, %v1096_v54 }
 0x51a   : > { %v1099_v56 = vsub.f32 %v1093_v52, %v1098_v55 }
 0x51c   : > { %v1100_v57 = vmul.f32 %v1099_v56, %v1099_v56 }
 0x51e   : > { %v1101_v58 = vsel %vm663_vm2, %v1100_v57, 0.0 }
 0x51f   : > { %1102 = vadd.xlane.f32.xlu1 %v1101_v58 }
 0x5ac   : > { %v1103_v61 = vpop.xlane.xlu1 %1102 }
 0x5ad   : > { %v1104_v7 = vmul.f32 0.03125, %v1103_v61 }
 0x5af   : > { %v1105_v62 = vadd.f32 1e-05, %v1104_v7  ;;  %v1290_v7 = vsub.s32 7, %v3152_v20 }
 0x5b1   : > { %2573 = vrsqrt.f32 %v1105_v62  ;;  %v3251_v62 = vrot.slane %v3156_v22, %v1290_v7 }
 0x5bb   : > { %v2574_v4 = vpop.eup %2573 }
 0x5bc   : > { %v1107_v6 = vmul.f32 %v2574_v4, %v1099_v56  ;;  %v3254_v4 = vld [vmem:[%s3087_s13 + $0x8] ss:$0 sm:$0xff] }
 0x5be   : > { %v1112_v9 = vmul.f32 %v3218_v1, %v1107_v6 }
 0x5c0   : > { %v1117_v10 = vadd.f32 %v3221_v8, %v1112_v9 }
 0x5c2   : > { %v1118_v11 = vpack.c.bf16 %v1117_v10, %v1117_v10 }
 0x5c4   : > { %2369 = vmatmul.mubr.msk.bf16.vlgmr.msra.gmra.mrb[16].mxu1 %vm663_vm2, %v1118_v11 }
 0x697   : > { %v1178_v26 = vpop.f32.mrb[16].mxu1 }
 0x698   : > { %v1179_v27 = vadd.f32 %v3238_v25, %v1178_v26  ;;  %v2370_v28 = vpop.f32.mrb[17].mxu1 }
 0x699   : > { %v1181_v29 = vpop.f32.mrb[18].mxu1 }
 0x69a   : > { %v1185_v30 = vmul.f32 0.044715, %v1179_v27  ;;  %v2371_v32 = vpop.f32.mrb[19].mxu1  ;;  %v1184_v39 = vmul.f32 0.5, %v1179_v27 }
 0x69c   : > { %v1186_v33 = vmul.f32 %v1185_v30, %v1179_v27 }
 0x69e   : > { %v1187_v34 = vmul.f32 %v1186_v33, %v1179_v27 }
 0x6a0   : > { %v1188_v35 = vadd.f32 %v1187_v34, %v1179_v27 }
 0x6a2   : > { %v1189_v37 = vmul.f32 0.7978846, %v1188_v35 }
 0x6a4   : > { %2575 = vtanh.f32 %v1189_v37 }
 0x6ae   : > { %v2576_v38 = vpop.eup %2575 }
 0x6af   : > { %v1191_v41 = vadd.f32 1.0, %v2576_v38 }
 0x6b1   : > { %v1192_v42 = vmul.f32 %v1191_v41, %v1184_v39 }
 0x6b3   : > { %v1193_v43 = vpack.c.bf16 %v1192_v42, %v1192_v42 }
 0x6b5   : > { %2381 = vmatmul.mubr.msk.bf16.vlgmr.msra.gmra.mrb[12].mxu0 %vm1230_vm8, %v1193_v43 }
 0x788   : > { %v1268_v47 = vpop.f32.mrb[12].mxu0 }
 0x789   : > { %v1269_v48 = vadd.f32 %v1268_v47, %v3244_v45  ;;  %v2382_v49 = vpop.f32.mrb[13].mxu0 }
 0x78a   : > { %v1271_v50 = vpop.f32.mrb[14].mxu0 }
 0x78b   : > { %v2383_v51 = vpop.f32.mrb[15].mxu0  ;;  %v1274_v52 = vadd.f32 %v1269_v48, %v1117_v10 }
 0x78d   : > { %v1275_v53 = vsel %vm663_vm2, %v1274_v52, 0.0 }
 0x78e   : > { %1276 = vadd.xlane.f32.xlu1 %v1275_v53 }
 0x81b   : > { %v1277_v54 = vpop.xlane.xlu1 %1276 }
 0x81c   : > { %v1278_v55 = vmul.f32 0.03125, %v1277_v54 }
 0x81e   : > { %v1279_v56 = vsub.f32 %v1274_v52, %v1278_v55 }
 0x820   : > { %v1280_v57 = vmul.f32 %v1279_v56, %v1279_v56 }
 0x822   : > { %v1281_v58 = vsel %vm663_vm2, %v1280_v57, 0.0 }
 0x823   : > { %1282 = vadd.xlane.f32.xlu1 %v1281_v58 }
 0x8b0   : > { %v1283_v59 = vpop.xlane.xlu1 %1282 }
 0x8b1   : > { %v1284_v60 = vmul.f32 0.03125, %v1283_v59 }
 0x8b3   : > { %v1285_v61 = vadd.f32 1e-05, %v1284_v60 }
 0x8b5   : > { %2577 = vrsqrt.f32 %v1285_v61 }
 0x8be   : > { %1301 = sbr.rel (%p2211_p5) target bundleno = 2247 (0x8c7), region = 88 }
 0x8bf   : > { %v2578_v63 = vpop.eup %2577 }
 0x8c0   : > { %v1287_v0 = vmul.f32 %v2578_v63, %v1279_v56 }
 0x8c2   : > { %v1292_v6 = vmul.f32 %v3251_v62, %v1287_v0 }
 0x8c4   : > { %v1297_v9 = vadd.f32 %v3254_v4, %v1292_v6 }
 0x8c6   : > { %1302 = vst.msk [vmem:[#allocation2] sm:$0xff] %vm663_vm2, %v1297_v9 }
 0x8c7 PF: > { %p2212_p8 = scmp.ne.s32.totalorder %s2789_s15, 1 }
 0x8c8   : > { %v1306_v22 = vsel (!%p2212_p8), %vm663_vm2, %v1297_v9, 0.0  ;;  %v1323_v28 = vrot.slane (!%p2212_p8), %v3097_v2, %v3168_v36  ;;  %v1330_v30 = vrot.slane (!%p2212_p8), %v3102_v3, %v3168_v36 }
 0x8c9   : > { %1305 = sbr.rel (%p2212_p8) target bundleno = 2562 (0xa02), region = 92  ;;  %1307 = vadd.xlane.f32.xlu0 (!%p2212_p8), %v1306_v22 }
 0x956   : > { %v1308_v10 = vpop.xlane.xlu0 %1307 }
 0x957   : > { %v1309_v11 = vmul.f32 0.03125, %v1308_v10 }
 0x959   : > { %v1310_v12 = vsub.f32 %v1297_v9, %v1309_v11 }
 0x95b   : > { %v1311_v19 = vmul.f32 %v1310_v12, %v1310_v12 }
 0x95d   : > { %v1312_v21 = vsel %vm663_vm2, %v1311_v19, 0.0 }
 0x95e   : > { %1313 = vadd.xlane.f32.xlu0 %v1312_v21 }
 0x9eb   : > { %v1314_v24 = vpop.xlane.xlu0 %1313 }
 0x9ec   : > { %v1315_v26 = vmul.f32 0.03125, %v1314_v24 }
 0x9ee   : > { %v1316_v27 = vadd.f32 1e-05, %v1315_v26 }
 0x9f0   : > { %2579 = vrsqrt.f32 %v1316_v27 }
 0x9fa   : > { %v2580_v29 = vpop.eup %2579 }
 0x9fb   : > { %v1318_v32 = vmul.f32 %v2580_v29, %v1310_v12 }
 0x9fd   : > { %v1325_v33 = vmul.f32 %v1323_v28, %v1318_v32 }
 0x9ff   : > { %v1332_v34 = vadd.f32 %v1330_v30, %v1325_v33 }
 0xa01   : > { %1333 = vst.msk [vmem:[#allocation11] sm:$0xff] %vm663_vm2, %v1332_v34 }
 0xa02 PF: > { %2384 = vmatprep.subr.bf16.mxu1 %v2807_v5  ;;  %v2581_v35 = vld [vmem:[%s3067_s25] sm:$0xff]   ;;  %2388 = vmatprep.mubr.msk.bf16.mxu1 %vm2808_vm1, %v2807_v5  ;;  %v2582_v37 = vld [vmem:[%s3067_s25 + $0x8] sm:$0xff]   ;;  %s2213_s20 = sld [smem:[#allocation4 + $0x1]] }
 0xa03   : > { %2385 = vmatpush3.bf16.msra.mxu1 %v2581_v35  ;;  %v3277_v38 = vld [vmem:[#allocation2 + $0x8] sm:$0xff]  ;;  %v2583_v41 = vld [vmem:[%s3072_s28] sm:$0xff]  }
 0xa04   : > { %2386 = vmatprep.subr.bf16.mxu1 %v2807_v5  ;;  %v1339_v39 = vpack.c.bf16 %v3277_v38, %v3277_v38  ;;  %v2584_v42 = vld [vmem:[%s3072_s28 + $0x8] sm:$0xff]   ;;  %v2585_v43 = vld [vmem:[%s3062_s19] sm:$0xff]  }
 0xa05   : > { %v2586_v44 = vld [vmem:[%s3062_s19 + $0x8] sm:$0xff]  }
 0xa07   : > { %2387 = vmatpush3.bf16.msra.mxu1 %v2582_v37 }
 0xa08   : > { %2392 = vmatprep.subr.bf16.mxu1 %v2807_v5 }
 0xa0a   : > { %2389 = vmatmul.mubr.msk.bf16.vlgmr.msra.gmra.mrb[20].mxu1 %vm663_vm2, %v1339_v39 }
 0xa0b   : > { %2393 = vmatpush3.bf16.msra.mxu1 %v2583_v41  ;;  %2396 = vmatprep.mubr.msk.bf16.mxu1 %vm2808_vm1, %v2807_v5 }
 0xa0c   : > { %2394 = vmatprep.subr.bf16.mxu1 %v2807_v5 }
 0xa0f   : > { %2395 = vmatpush3.bf16.msra.mxu1 %v2584_v42 }
 0xa10   : > { %2406 = vmatprep.subr.bf16.mxu1 %v2807_v5 }
 0xa12   : > { %2397 = vmatmul.mubr.msk.bf16.vlgmr.msra.gmra.mrb[24].mxu1 %vm663_vm2, %v1339_v39 }
 0xa13   : > { %2407 = vmatpush3.bf16.msra.mxu1 %v2585_v43  ;;  %2410 = vmatprep.mubr.msk.bf16.mxu1 %vm2808_vm1, %v2807_v5 }
 0xa14   : > { %2408 = vmatprep.subr.bf16.mxu1 %v2807_v5 }
 0xa17   : > { %2409 = vmatpush3.bf16.msra.mxu1 %v2586_v44 }
 0xa18   : > { %2422 = vmatprep.subr.bf16.mxu1 %v2807_v5 }
 0xa1a   : > { %2411 = vmatmul.mubr.msk.bf16.vlgmr.msra.gmra.mrb[28].mxu1 %vm663_vm2, %v1339_v39 }
 0xa1b   : > { %2423 = vmatpush3.bf16.msra.mxu1 %v3138_v15  ;;  %2426 = vmatprep.mubr.msk.bf16.mxu1 %vm2808_vm1, %v2807_v5  ;;  %v1455_v15 = vstv %s2213_s20 }
 0xa1c   : > { %2424 = vmatprep.subr.bf16.mxu1 %v2807_v5  ;;  %vm1456_vm9 = vcmp.lt.s32.totalorder %v3152_v20, %v1455_v15 }
 0xa1d   : > { %v2220_v59 = vsel %vm1456_vm9, 1.0, %v2807_v5 }
 0xa1f   : > { %2425 = vmatpush3.bf16.msra.mxu1 %v3148_v18 }
 0xa20   : > { %2438 = vmatprep.subr.bf16.mxu1 %v2807_v5 }
 0xadd   : > { %v1393_v47 = vpop.f32.mrb[20].mxu1 }
 0xade   : > { %v1394_v48 = vadd.f32 %v1393_v47, %v3159_v23  ;;  %v2390_v49 = vpop.f32.mrb[21].mxu1 }
 0xadf   : > { %v1396_v50 = vpop.f32.mrb[22].mxu1 }
 0xae0   : > { %v1461_v51 = vmul.f32 1.442695, %v1394_v48  ;;  %v2391_v52 = vpop.f32.mrb[23].mxu1  ;;  %v1460_v23 = vadd.f32 1.0, %v1394_v48  ;;  %vm1459_vm10 = vcmp.gt.f32.partialorder %v1394_v48, 0.0 }
 0xae2   : > { %2595 = vpow2.f32 %v1461_v51 }
 0xae5   : > { %v1449_v53 = vpop.f32.mrb[24].mxu1 }
 0xae6   : > { %v1450_v54 = vadd.f32 %v1449_v53, %v3164_v31  ;;  %v2398_v55 = vpop.f32.mrb[25].mxu1  ;;  %v2587_v53 = vld [vmem:[%s3077_s21] sm:$0xff]  }
 0xae7   : > { %v1452_v56 = vpop.f32.mrb[26].mxu1 }
 0xae8   : > { %v1466_v57 = vpack.c.bf16 %v1450_v54, %v1450_v54  ;;  %v2399_v58 = vpop.f32.mrb[27].mxu1 }
 0xaea   : > { %2459 = vmatprep.subr.msk.bf16.mxu0 %vm806_vm3, %v1466_v57  ;;  %v1490_v18 = vsel %vm806_vm3, %v1466_v57, 0 }
 0xaeb   : > { %2401 = vmatpush3.bf16.msra.mxu0 %v1490_v18 }
 0xaec   : > { %v2596_v60 = vpop.eup %2595  ;;  %2414 = vmatprep.subr.bf16.mxu0 %v2807_v5 }
 0xaed   : > { %v1605_v61 = vpop.f32.mrb[28].mxu1  ;;  %v1463_v31 = vsel %vm1459_vm10, %v1460_v23, %v2596_v60 }
 0xaee   : > { %v1606_v7 = vadd.f32 %v1605_v61, %v3173_v40  ;;  %v1464_v63 = vmul.f32 %v2220_v59, %v1463_v31  ;;  %v2412_v0 = vpop.f32.mrb[29].mxu1 }
 0xaef   : > { %v1608_v6 = vpop.f32.mrb[30].mxu1 }
 0xaf0   : > { %v1613_v20 = vmul.f32 1.442695, %v1606_v7  ;;  %v1465_v9 = vpack.c.bf16 %v1464_v63, %v1464_v63  ;;  %v2413_v22 = vpop.f32.mrb[31].mxu1  ;;  %v1541_v10 = vsel %vm663_vm2, %v1464_v63, 0.0  ;;  %v1612_v24 = vadd.f32 1.0, %v1606_v7 }
 0xaf1   : > { %v1542_v11 = vrot.slane %v1541_v10, 4  ;;  %vm1611_vm11 = vcmp.gt.f32.partialorder %v1606_v7, 0.0  ;;  %v2589_v22 = vld [vmem:[%s3043_s8] sm:$0xff]  }
 0xaf2   : > { %2597 = vpow2.f32 %v1613_v20  ;;  %1467 = vxpose.xlu0.c.b16.start.end [1/1] (short) (narrow) %v1465_v9, 32 }
 0xaf3   : > { %v1543_v12 = vadd.f32 %v1542_v11, %v1541_v10 }
 0xaf5   : > { %v1544_v19 = vrot.slane %v1543_v12, 2 }
 0xaf7   : > { %v1545_v21 = vadd.f32 %v1544_v19, %v1543_v12 }
 0xaf9   : > { %v1546_v26 = vrot.slane %v1545_v21, 1 }
 0xafb   : > { %v1547_v28 = vadd.f32 %v1546_v26, %v1545_v21 }
 0xafc   : > { %v2598_v27 = vpop.eup %2597 }
 0xafd   : > { %v1615_v40 = vsel %vm1611_vm11, %v1612_v24, %v2598_v27  ;;  %v2591_v27 = vld [vmem:[%s3082_s9] sm:$0xff]  }
 0xafe   : > { %v1660_v29 = vmul.f32 %v1615_v40, %v1547_v28  ;;  %v1616_v15 = vpack.c.bf16 %v1615_v40, %v1615_v40  ;;  %v2592_v28 = vld [vmem:[%s3082_s9 + $0x8] sm:$0xff]   ;;  %v2593_v40 = vld [vmem:[%s3082_s9 + $0x10] sm:$0xff]  }
 0xb00   : > { %v1661_v30 = vpack.c.bf16 %v1660_v29, %v1660_v29  ;;  %v2594_v29 = vld [vmem:[%s3082_s9 + $0x18] sm:$0xff]  }
 0xb02   : > { %2427 = vmatmul.mubr.msk.bf16.vlgmr.msra.gmra.mrb[32].mxu1 %vm663_vm2, %v1661_v30 }
 0xb03   : > { %2442 = vmatprep.mubr.msk.bf16.mxu1 %vm2808_vm1, %v2807_v5  ;;  %2439 = vmatpush3.bf16.msra.mxu1 %v2589_v22 }
 0xb04   : > { %2440 = vmatprep.subr.bf16.mxu1 %v2807_v5 }
 0xb58   : > { %v1475_v32 = vpop.trf.xlu0 }
 0xb59   : > { %2402 = vmatprep.mubr.msk.bf16.mxu0 %vm799_vm7, %v1475_v32 }
 0xb5c   : > { %v1476_v33 = vpop.trf.xlu0 }
 0xb5d   : > { %2403 = vmatmul.mubr.msk.bf16.vlgmr.msra.gmra.mrb[16].mxu0 %vm799_vm7, %v1476_v33 }
 0xb5e   : > { %2418 = vmatprep.mubr.msk.bf16.mxu0 %vm2808_vm1, %v2807_v5 }
 0xbd5   : > { %v1699_v34 = vpop.f32.mrb[32].mxu1 }
 0xbd6   : > { %v2428_v35 = vpop.f32.mrb[33].mxu1 }
 0xbd7   : > { %v1702_v37 = vpop.f32.mrb[34].mxu1 }
 0xbd8   : > { %v2429_v39 = vpop.f32.mrb[35].mxu1 }
 0xc30   : > { %v2404_v41 = vpop.f32.mrb[16].mxu0 }
 0xc31   : > { %v1526_v42 = vpop.f32.mrb[17].mxu0  ;;  %v1551_v44 = vmul.f32 %v2404_v41, %v3142_v16 }
 0xc32   : > { %v2405_v43 = vpop.f32.mrb[18].mxu0  ;;  %v1549_v49 = vmul.f32 %v1526_v42, %v3132_v13  ;;  %v2588_v13 = vld [vmem:[%s3077_s21 + $0x8] sm:$0xff]  }
 0xc33   : > { %v1552_v47 = vmul.f32 %v2405_v43, %v3144_v17  ;;  %v1529_v48 = vpop.f32.mrb[19].mxu0 }
 0xc34   : > { %v1550_v50 = vmul.f32 %v1529_v48, %v3134_v14  ;;  %v1700_v14 = vadd.f32 1e-06, %v1699_v34 }
 0xc35   : > { %v1554_v51 = vpack.c.bf16 %v1552_v47, %v1551_v44 }
 0xc36   : > { %v1553_v52 = vpack.c.bf16 %v1550_v50, %v1549_v49  ;;  %2599 = vrcp.f32 %v1700_v14 }
 0xc38   : > { %2415 = vmatpush3.bf16.msra.mxu0 %v1553_v52 }
 0xc39   : > { %2416 = vmatprep.subr.bf16.mxu0 %v2807_v5 }
 0xc3c   : > { %2417 = vmatpush3.bf16.msra.mxu0 %v1554_v51 }
 0xc3d   : > { %2430 = vmatprep.subr.bf16.mxu0 %v2807_v5 }
 0xc3f   : > { %2419 = vmatmul.mubr.msk.bf16.vlgmr.msra.gmra.mrb[20].mxu0 %vm663_vm2, %v1616_v15 }
 0xc40   : > { %2431 = vmatpush3.bf16.msra.mxu0 %v2587_v53  ;;  %2434 = vmatprep.mubr.msk.bf16.mxu0 %vm2808_vm1, %v2807_v5  ;;  %v2600_v16 = vpop.eup %2599 }
 0xc41   : > { %2432 = vmatprep.subr.bf16.mxu0 %v2807_v5 }
 0xc44   : > { %2433 = vmatpush3.bf16.msra.mxu0 %v2588_v13 }
 0xc45   : > { %2446 = vmatprep.subr.bf16.mxu0 %v2807_v5 }
 0xd12   : > { %v1654_v17 = vpop.f32.mrb[20].mxu0 }
 0xd13   : > { %v1706_v54 = vmul.f32 %v2600_v16, %v1654_v17  ;;  %v2420_v55 = vpop.f32.mrb[21].mxu0 }
 0xd14   : > { %v1657_v56 = vpop.f32.mrb[22].mxu0 }
 0xd15   : > { %v1707_v57 = vpack.c.bf16 %v1706_v54, %v1706_v54  ;;  %v2421_v58 = vpop.f32.mrb[23].mxu0 }
 0xd17   : > { %2435 = vmatmul.mubr.msk.bf16.vlgmr.msra.gmra.mrb[24].mxu0 %vm663_vm2, %v1707_v57 }
 0xd18   : > { %2454 = vmatprep.mubr.msk.bf16.mxu0 %vm2808_vm1, %v2807_v5  ;;  %2447 = vmatpush3.bf16.msra.mxu0 %v2591_v27 }
 0xd19   : > { %2448 = vmatprep.subr.bf16.mxu0 %v2807_v5 }
 0xd1c   : > { %2449 = vmatpush3.bf16.msra.mxu0 %v2592_v28 }
 0xd1d   : > { %2450 = vmatprep.subr.bf16.mxu0 %v2807_v5 }
 0xd20   : > { %2451 = vmatpush3.bf16.msra.mxu0 %v2593_v40 }
 0xd21   : > { %2452 = vmatprep.subr.bf16.mxu0 %v2807_v5 }
 0xd24   : > { %2453 = vmatpush3.bf16.msra.mxu0 %v2594_v29 }
 0xdea   : > { %v1761_v18 = vpop.f32.mrb[24].mxu0 }
 0xdeb   : > { %v1762_v23 = vadd.f32 %v1761_v18, %v3206_v46  ;;  %v2436_v59 = vpop.f32.mrb[25].mxu0  ;;  %v2590_v46 = vld [vmem:[%s3043_s8 + $0x8] sm:$0xff]  }
 0xdec   : > { %v1764_v60 = vpop.f32.mrb[26].mxu0  ;;  %2441 = vmatpush3.bf16.msra.mxu1 %v2590_v46 }
 0xded   : > { %v2437_v61 = vpop.f32.mrb[27].mxu0  ;;  %v1767_v31 = vadd.f32 %v1762_v23, %v3277_v38 }
 0xdef   : > { %v1768_v7 = vsel %vm663_vm2, %v1767_v31, 0.0 }
 0xdf0   : > { %1769 = vadd.xlane.f32.xlu0 %v1768_v7 }
 0xe7d   : > { %v1770_v63 = vpop.xlane.xlu0 %1769 }
 0xe7e   : > { %v1771_v0 = vmul.f32 0.03125, %v1770_v63 }
 0xe80   : > { %v1772_v6 = vsub.f32 %v1767_v31, %v1771_v0 }
 0xe82   : > { %v1773_v20 = vmul.f32 %v1772_v6, %v1772_v6 }
 0xe84   : > { %v1774_v9 = vsel %vm663_vm2, %v1773_v20, 0.0 }
 0xe85   : > { %1775 = vadd.xlane.f32.xlu1 %v1774_v9 }
 0xf12   : > { %v1776_v38 = vpop.xlane.xlu1 %1775 }
 0xf13   : > { %v1777_v10 = vmul.f32 0.03125, %v1776_v38 }
 0xf15   : > { %v1778_v11 = vadd.f32 1e-05, %v1777_v10 }
 0xf17   : > { %2601 = vrsqrt.f32 %v1778_v11 }
 0xf21   : > { %v2602_v12 = vpop.eup %2601 }
 0xf22   : > { %v1780_v19 = vmul.f32 %v2602_v12, %v1772_v6 }
 0xf24   : > { %v1781_v21 = vmul.f32 %v1780_v19, %v3218_v1 }
 0xf26   : > { %v1782_v24 = vadd.f32 %v1781_v21, %v3221_v8 }
 0xf28   : > { %v1783_v26 = vpack.c.bf16 %v1782_v24, %v1782_v24 }
 0xf2a   : > { %2443 = vmatmul.mubr.msk.bf16.vlgmr.msra.gmra.mrb[36].mxu1 %vm663_vm2, %v1783_v26 }
 0xffd   : > { %v1837_v1 = vpop.f32.mrb[36].mxu1 }
 0xffe   : > { %v1838_v8 = vadd.f32 %v3238_v25, %v1837_v1  ;;  %v2444_v30 = vpop.f32.mrb[37].mxu1 }
 0xfff   : > { %v1840_v32 = vpop.f32.mrb[38].mxu1 }
0x1000   : > { %v1844_v33 = vmul.f32 0.044715, %v1838_v8  ;;  %v2445_v34 = vpop.f32.mrb[39].mxu1  ;;  %v1843_v43 = vmul.f32 0.5, %v1838_v8 }
0x1002   : > { %v1845_v35 = vmul.f32 %v1844_v33, %v1838_v8 }
0x1004   : > { %v1846_v37 = vmul.f32 %v1845_v35, %v1838_v8 }
0x1006   : > { %v1847_v39 = vadd.f32 %v1846_v37, %v1838_v8 }
0x1008   : > { %v1848_v41 = vmul.f32 0.7978846, %v1847_v39 }
0x100a   : > { %2603 = vtanh.f32 %v1848_v41 }
0x1014   : > { %v2604_v42 = vpop.eup %2603 }
0x1015   : > { %v1850_v44 = vadd.f32 1.0, %v2604_v42 }
0x1017   : > { %v1851_v47 = vmul.f32 %v1850_v44, %v1843_v43 }
0x1019   : > { %v1852_v48 = vpack.c.bf16 %v1851_v47, %v1851_v47 }
0x101b   : > { %2455 = vmatmul.mubr.msk.bf16.vlgmr.msra.gmra.mrb[28].mxu0 %vm1230_vm8, %v1852_v48 }
0x10ee   : > { %v1922_v5 = vpop.f32.mrb[28].mxu0 }
0x10ef   : > { %v1923_v49 = vadd.f32 %v1922_v5, %v3244_v45  ;;  %v2456_v25 = vpop.f32.mrb[29].mxu0 }
0x10f0   : > { %v1925_v50 = vpop.f32.mrb[30].mxu0 }
0x10f1   : > { %v2457_v51 = vpop.f32.mrb[31].mxu0  ;;  %v1928_v52 = vadd.f32 %v1923_v49, %v1782_v24 }
0x10f3   : > { %v1929_v53 = vsel %vm663_vm2, %v1928_v52, 0.0 }
0x10f4   : > { %1930 = vadd.xlane.f32.xlu1 %v1929_v53 }
0x1181   : > { %v1931_v15 = vpop.xlane.xlu1 %1930 }
0x1182   : > { %v1932_v13 = vmul.f32 0.03125, %v1931_v15 }
0x1184   : > { %v1933_v14 = vsub.f32 %v1928_v52, %v1932_v13 }
0x1186   : > { %v1934_v16 = vmul.f32 %v1933_v14, %v1933_v14 }
0x1188   : > { %v1935_v17 = vsel %vm663_vm2, %v1934_v16, 0.0 }
0x1189   : > { %1936 = vadd.xlane.f32.xlu1 %v1935_v17 }
0x1216   : > { %v1937_v54 = vpop.xlane.xlu1 %1936 }
0x1217   : > { %v1938_v55 = vmul.f32 0.03125, %v1937_v54 }
0x1219   : > { %v1939_v56 = vadd.f32 1e-05, %v1938_v55 }
0x121b   : > { %2605 = vrsqrt.f32 %v1939_v56 }
0x1224   : > { %1946 = sbr.rel (%p2211_p5) target bundleno = 4653 (0x122d), region = 96 }
0x1225   : > { %v2606_v57 = vpop.eup %2605 }
0x1226   : > { %v1941_v45 = vmul.f32 %v2606_v57, %v1933_v14 }
0x1228   : > { %v1942_v58 = vmul.f32 %v1941_v45, %v3251_v62 }
0x122a   : > { %v1943_v18 = vadd.f32 %v3254_v4, %v1942_v58 }
0x122c   : > { %1947 = vst.msk [vmem:[#allocation2 + $0x8] sm:$0xff] %vm663_vm2, %v1943_v18 }
0x122d PF: > { %1950 = sbr.rel (%p2212_p8) target bundleno = 4967 (0x1367), region = 100  ;;  %v1951_v23 = vsel (!%p2212_p8), %vm663_vm2, %v1943_v18, 0.0  ;;  %v1968_v0 = vrot.slane (!%p2212_p8), %v3097_v2, %v3168_v36  ;;  %v1975_v20 = vrot.slane (!%p2212_p8), %v3102_v3, %v3168_v36 }
0x122e   : > { %1952 = vadd.xlane.f32.xlu0 (!%p2212_p8), %v1951_v23 }
0x12bb   : > { %v1953_v59 = vpop.xlane.xlu0 %1952 }
0x12bc   : > { %v1954_v60 = vmul.f32 0.03125, %v1953_v59 }
0x12be   : > { %v1955_v61 = vsub.f32 %v1943_v18, %v1954_v60 }
0x12c0   : > { %v1956_v31 = vmul.f32 %v1955_v61, %v1955_v61 }
0x12c2   : > { %v1957_v62 = vsel %vm663_vm2, %v1956_v31, 0.0 }
0x12c3   : > { %1958 = vadd.xlane.f32.xlu0 %v1957_v62 }
0x1350   : > { %v1959_v4 = vpop.xlane.xlu0 %1958 }
0x1351   : > { %v1960_v7 = vmul.f32 0.03125, %v1959_v4 }
0x1353   : > { %v1961_v63 = vadd.f32 1e-05, %v1960_v7 }
0x1355   : > { %2607 = vrsqrt.f32 %v1961_v63 }
0x135f   : > { %v2608_v6 = vpop.eup %2607 }
0x1360   : > { %v1963_v9 = vmul.f32 %v2608_v6, %v1955_v61 }
0x1362   : > { %v1970_v22 = vmul.f32 %v1968_v0, %v1963_v9 }
0x1364   : > { %v1977_v46 = vadd.f32 %v1975_v20, %v1970_v22 }
0x1366   : > { %1979 = vst.msk [vmem:[#allocation11 + $0x8] sm:$0xff] %vm663_vm2, %v1977_v46 }
0x1367 PF: > { %p2490_p1 = scmp.eq.s32.totalorder %s2914_s18, 1  ;;  %s2809_s15 = smov [#allocation11]  }
0x1368   : > { %s1989_s8 = sshll.u32 %s2809_s15, 4  ;;  %s1990_s8 = int_to_ptr.vmem [resolvable:$true] %s1989_s8 }
0x1369   : > { %s2707_s19 = scalar_lea.vmem %s1990_s8, 256  ;;  %p2714_p13 = scmp.lt.s32.totalorder %s1990_s8, %s1990_s8 }
0x136a   : > { %p2708_p3 = scmp.ne.s32.totalorder %s1990_s8, %s2707_s19  ;;  %p2715_p4 = scmp.lt.s32.totalorder %s2707_s19, %s2707_s19 }
0x136c   : > { %p2709_p6 = pnand %p2708_p3, %p2490_p1  ;;  %p2716_p9 = por %p2715_p4, %p2714_p13 }
0x136e   : > { %p2710_p7 = pneg %p2709_p6 }
0x1370   : > { %p2717_p10 = pnand %p2716_p9, %p2710_p7 }
0x1372   : > { %2720 = shalt.err (!%p2717_p10)
}
0x1373   : > { %s3467_s21 = sld [smem:[#allocation28_spill]] }
0x1379   : > { %s2721_s26 = scalar_lea.hbm %s3467_s21, 256 }
0x137a   : > { %p2722_p12 = scmp.ne.s32.totalorder %s3467_s21, %s2721_s26  ;;  %p2727_p2 = scmp.lt.u32.totalorder %s2721_s26, %s3467_s21 }
0x137c   : > { %p2723_p11 = pnand %p2722_p12, %p2490_p1 }
0x137e   : > { %p2724_p0 = pneg %p2723_p11 }
0x1380   : > { %p2729_p5 = pnand %p2727_p2, %p2724_p0 }
0x1382   : > { %2732 = shalt.err (!%p2729_p5)
}
0x1383   : > { %s2810_s27 = smov 128   ;;  %s2811_s1 = smov 8  }
0x1384   : > { %2471 = dma.vmem_to_hbm [thread:$0]  (%p2490_p1), %s1990_s8, 256, %s3467_s21, [#allocation7], %s2810_s27, %s2810_s27, %s2811_s1  }
0x1385   : > { %2772 = dma.done.wait (%p2490_p1), [#allocation7], 256  }
0x1386   : > { %2774 = vsyncadd (%p2490_p1), [#allocation7], 4294967040 }
0x1387 PF: > { %s34_s17 = sadd.s32 1, %s2797_s17   ;;  %s3468_s2 = smov %s3003_s30 }
0x1388   : > { %p31_p8 = scmp.ge.s32.totalorder %s34_s17, 4   ;;  %s3469_s3 = sld [smem:[#allocation17_spill]] }
0x1389   : > { %s3470_s30 = smov %s2781_s0  ;;  %s3471_s0 = smov %s2785_s14 }
0x138a   : > { %s3472_s14 = smov %s3468_s2  ;;  %s3473_s15 = smov %s2793_s16 }
0x138b   :  { %33 = sbr.rel (!%p31_p8) target bundleno = 24 (0x18), region = 159 }
0x138e   : > { %s3474_s16 = smov %s3469_s3 }
0x1392   :  { %2005 = vsyncpa [#allocation6], 1 }
0x1393   :  { %2007 = vsyncpa [#allocation6 + $0x1], 1 }
0x1394   :  { %2008 = vsyncpa [#allocation9], 1 }
0x1395   :  { %2010 = vsyncpa [#allocation9 + $0x1], 1 }
0x1396   :  { %2011 = vsyncpa [#allocation7], 1 }
0x1397   :  { %2013 = vsyncpa [#allocation7 + $0x1], 1 }

</bundles_post_ra>
